<compile_context>
chip_gen: v7x
topology: tpu7x:2x2x1
jax: 0.10.0
libtpu: 0.0.40
codegen_flags: <defaults>
</compile_context>

<pallas_src>
import functools
import math

import jax
import jax.numpy as jnp
from jax.experimental import pallas as pl
from jax.experimental.pallas import tpu as pltpu


def _round_up(n, m):
    return ((n + m - 1) // m) * m


def _itemsize(dtype):
    return jax.dtypes.canonicalize_dtype(dtype).itemsize


@functools.lru_cache(maxsize=1)
def _vmem_capacity():
    try:
        return int(pltpu.get_tpu_info().vmem_capacity_bytes)
    except Exception:
        return 64 * 2 ** 20          # conservative (v7x); v5e/v6e have 128 MiB


def _conv_vmem_bytes(m, halo_len, cin_p, cout_p, k_total, out_isz):
    """Rough per-grid-step VMEM working set (double-buffered in/out + scratch)."""
    return (2 * m * cin_p * 2 +              # main input block (bf16, x2 buffers)
            2 * halo_len * cin_p * 2 +       # halo block
            2 * k_total * cout_p * 2 +       # folded weights
            2 * cout_p * 4 +                 # bias
            2 * m * cout_p * out_isz +       # output block (x2 buffers)
            m * k_total * 2 +                # LHS scratch (bf16)
            m * cout_p * 4)                  # f32 matmul result


def _pick_tile_h(ho, wp, cin_p, cout_p, k_total, halo_len, out_isz, max_tile_h=None):
    """Largest divisor of Ho (multiple of 8 unless == Ho) whose step fits VMEM."""
    budget = int(_vmem_capacity() * 0.55)
    cands = [d for d in range(1, ho + 1)
             if ho % d == 0 and (d == ho or d % 8 == 0)]
    if max_tile_h is not None:
        capped = [d for d in cands if d <= max_tile_h]
        cands = capped or cands[:1]
    best = cands[0]
    for d in cands:
        if _conv_vmem_bytes(d * wp, halo_len, cin_p, cout_p, k_total, out_isz) <= budget:
            best = d
    return best


# --------------------------------------------------------------------------- #
# Kernel 1: implicit-im2col conv, taps folded into the MXU contraction.
#   xm_ref : (M, Cin_p)        bf16   main rows of this output tile
#   xh_ref : (halo_len, Cin_p) bf16   rows just below the tile (halo)
#   w_ref  : (kh*kw*Cin_p, Cout_p) bf16
#   b_ref  : (1, Cout_p)       f32
#   o_ref  : (M, Cout_p)       out dtype
#   lhs_ref: (M, kh*kw*Cin_p)  bf16   VMEM scratch holding the K-folded LHS
# --------------------------------------------------------------------------- #
def _conv_kernel(xm_ref, xh_ref, w_ref, b_ref, o_ref, lhs_ref, *, shifts, cin_p, act):
    m = lhs_ref.shape[0]
    # Build the K-folded LHS: strip t = activation shifted by the flat-row
    # offset of tap t; rows past the main block come from the halo operand.
    for t, s in enumerate(shifts):
        col = pl.ds(t * cin_p, cin_p)
        n_main = max(m - s, 0)
        n_halo = m - n_main
        if n_halo == 0:
            lhs_ref[:, col] = xm_ref[...]
        else:
            if n_main > 0:
                lhs_ref[pl.ds(0, n_main), col] = xm_ref[pl.ds(s, n_main), :]
            lhs_ref[pl.ds(n_main, n_halo), col] = xh_ref[pl.ds(s - n_halo, n_halo), :]
    # One K-folded MXU matmul, f32 accumulation, fused bias + SiLU.
    acc = jnp.dot(lhs_ref[...], w_ref[...], preferred_element_type=jnp.float32)
    acc = acc + b_ref[...]
    if act:
        acc = acc * jax.nn.sigmoid(acc)          # SiLU
    o_ref[...] = acc.astype(o_ref.dtype)


def conv2d_pallas(x, w, b, *, pads, act, out_dtype=jnp.bfloat16, max_tile_h=None):
    """Stride-1 conv, NHWC.  x:(N,H,W,Cin)  w:(kh,kw,Cin,Cout)  b:(Cout,).

    pads = (top, bottom, left, right).  One pallas_call per layer; grid =
    (batch, output-row-tiles), both "parallel".
    """
    N, H, W, Cin = x.shape
    kh, kw, wcin, Cout = w.shape
    assert wcin == Cin
    pt, pb, pleft, pright = pads

    Wp = W + pleft + pright
    Ho = H + pt + pb - kh + 1
    Wo = Wp - kw + 1
    T = kh * kw

    Cin_p = _round_up(max(Cin, 16), 16)          # bf16-friendly contraction pad
    Cout_p = _round_up(Cout, 128)                # lane-dense output
    K_total = T * Cin_p
    out_isz = _itemsize(out_dtype)

    shifts = tuple(i * Wp + j for i in range(kh) for j in range(kw))
    s_max = shifts[-1]
    halo_len = max(s_max, 8)
    # Extra zero rows at the bottom so the halo slice never reads out of bounds.
    extra_rows = -(-max(0, halo_len - (kh - 1) * Wp) // Wp)
    Hp = H + pt + pb + extra_rows

    xp = jnp.pad(x.astype(jnp.bfloat16),
                 ((0, 0), (pt, pb + extra_rows), (pleft, pright), (0, Cin_p - Cin)))
    xf = xp.reshape(N, Hp * Wp, Cin_p)
    xm = xf[:, : Ho * Wp, :]

    tile_h = _pick_tile_h(Ho, Wp, Cin_p, Cout_p, K_total, halo_len, out_isz,
                          max_tile_h=max_tile_h)
    RT = Ho // tile_h
    M = tile_h * Wp

    halos = [xf[:, (r + 1) * M: (r + 1) * M + halo_len, :] for r in range(RT)]
    xh = jnp.stack(halos, axis=1)                # (N, RT, halo_len, Cin_p)

    wp = jnp.pad(w.astype(jnp.bfloat16),
                 ((0, 0), (0, 0), (0, Cin_p - Cin), (0, Cout_p - Cout)))
    wf = wp.reshape(K_total, Cout_p)
    bp = jnp.pad(b.astype(jnp.float32), (0, Cout_p - Cout)).reshape(1, Cout_p)

    est = _conv_vmem_bytes(M, halo_len, Cin_p, Cout_p, K_total, out_isz)
    cap = _vmem_capacity()
    vmem_limit = int(min(cap * 0.9, max(64 * 2 ** 20, est * 2)))

    cost = pl.CostEstimate(
        flops=int(2 * N * Ho * Wp * K_total * Cout_p),
        transcendentals=int(N * Ho * Wp * Cout_p) if act else 0,
        bytes_accessed=int(xm.size * 2 + xh.size * 2 + wf.size * 2 + bp.size * 4
                           + N * Ho * Wp * Cout_p * out_isz),
    )

    out = pl.pallas_call(
        functools.partial(_conv_kernel, shifts=shifts, cin_p=Cin_p, act=act),
        out_shape=jax.ShapeDtypeStruct((N, Ho * Wp, Cout_p), out_dtype),
        grid_spec=pltpu.PrefetchScalarGridSpec(
            num_scalar_prefetch=0,
            grid=(N, RT),
            in_specs=[
                pl.BlockSpec((None, M, Cin_p), lambda n, r: (n, r, 0)),
                pl.BlockSpec((None, None, halo_len, Cin_p), lambda n, r: (n, r, 0, 0)),
                pl.BlockSpec((K_total, Cout_p), lambda n, r: (0, 0)),
                pl.BlockSpec((1, Cout_p), lambda n, r: (0, 0)),
            ],
            out_specs=pl.BlockSpec((None, M, Cout_p), lambda n, r: (n, r, 0)),
            scratch_shapes=[pltpu.VMEM((M, K_total), jnp.bfloat16)],
        ),
        compiler_params=pltpu.CompilerParams(
            dimension_semantics=("parallel", "parallel"),
            vmem_limit_bytes=vmem_limit,
        ),
        cost_estimate=cost,
    )(xm, xh, wf, bp)

    # Drop garbage columns (w in [Wo, Wp)) and padded channels.
    out = out.reshape(N, Ho, Wp, Cout_p)[:, :, :Wo, :Cout]
    return out


# --------------------------------------------------------------------------- #
# Weight remaps (done once at init).
# --------------------------------------------------------------------------- #
def _make_s2d_weights(w):
    """3x3 stride-2 pad-1 conv -> 2x2 stride-1 conv over space-to-depth input."""
    kh, kw, Cin, Cout = w.shape
    assert kh == 3 and kw == 3
    phase_map = ((0, 1), (1, 0), (1, 1))     # orig tap idx -> (s2d tap, phase)
    w2 = jnp.zeros((2, 2, 2, 2, Cin, Cout), w.dtype)
    for i, (dh, a) in enumerate(phase_map):
        for j, (dw_, bb) in enumerate(phase_map):
            w2 = w2.at[dh, dw_, a, bb].set(w[i, j])
    return w2.reshape(2, 2, 4 * Cin, Cout)


def _make_subpixel_weights(w, b):
    """nearest-2x upsample + 3x3 pad-1 conv  ->  3x3 pad-1 conv with 4*Cout
    phase channels on the low-res input (exact; depth-to-space afterwards)."""
    kh, kw, Cin, Cout = w.shape
    assert kh == 3 and kw == 3
    row_maps = {0: ((0,), (1, 2), ()), 1: ((), (0, 1), (2,))}
    w4 = jnp.zeros((3, 3, Cin, 2, 2, Cout), w.dtype)
    for a in (0, 1):
        for bb in (0, 1):
            for di in range(3):
                for dj in range(3):
                    acc = None
                    for oi in row_maps[a][di]:
                        for oj in row_maps[bb][dj]:
                            term = w[oi, oj]
                            acc = term if acc is None else acc + term
                    if acc is not None:
                        w4 = w4.at[di, dj, :, a, bb, :].set(acc)
    return w4.reshape(3, 3, Cin, 4 * Cout), jnp.tile(b, 4)


def _fuse_conv_1x1(w1, b1, w2, b2):
    """conv(kxk, w1, b1) followed by 1x1 conv(w2, b2): exact composition."""
    w2m = w2[0, 0]
    return jnp.einsum("hwim,mo->hwio", w1, w2m), b1 @ w2m + b2


def conv2d_stride2_pallas(x, w2, b, *, act, out_dtype=jnp.bfloat16):
    """3x3 / stride-2 / pad-1 conv, weights already remapped by _make_s2d_weights."""
    N, H, W, Cin = x.shape
    assert H % 2 == 0 and W % 2 == 0 and w2.shape[:3] == (2, 2, 4 * Cin)
    x_sd = x.reshape(N, H // 2, 2, W // 2, 2, Cin)
    x_sd = x_sd.transpose(0, 1, 3, 2, 4, 5).reshape(N, H // 2, W // 2, 4 * Cin)
    return conv2d_pallas(x_sd, w2, b, pads=(1, 0, 1, 0), act=act, out_dtype=out_dtype)


def upsample2x_conv_pallas(x, w4, b4, *, act, out_dtype=jnp.bfloat16):
    """Fused nearest-2x upsample + 3x3 conv via subpixel conv + depth-to-space."""
    N, Hl, Wl, Cin = x.shape
    Cout = w4.shape[-1] // 4
    y = conv2d_pallas(x, w4, b4, pads=(1, 1, 1, 1), act=act, out_dtype=out_dtype)
    y = y.reshape(N, Hl, Wl, 2, 2, Cout).transpose(0, 1, 3, 2, 4, 5)
    return y.reshape(N, 2 * Hl, 2 * Wl, Cout)


# --------------------------------------------------------------------------- #
# Kernel 2: global min/max (the self.last_min / self.last_max statistic).
# --------------------------------------------------------------------------- #
def _minmax_small_kernel(x_ref, min_ref, max_ref):
    min_ref[...] = jnp.min(x_ref[...], axis=(0, 1), keepdims=True)
    max_ref[...] = jnp.max(x_ref[...], axis=(0, 1), keepdims=True)


def _minmax_grid_kernel(x_ref, min_ref, max_ref):
    tmin = jnp.min(x_ref[...], axis=(0, 1), keepdims=True)
    tmax = jnp.max(x_ref[...], axis=(0, 1), keepdims=True)

    @pl.when(pl.program_id(0) == 0)
    def _():
        min_ref[...] = tmin
        max_ref[...] = tmax

    @pl.when(pl.program_id(0) > 0)
    def _():
        min_ref[...] = jnp.minimum(min_ref[...], tmin)
        max_ref[...] = jnp.maximum(max_ref[...], tmax)


def pallas_minmax(x):
    xf32 = x.astype(jnp.float32)
    n = xf32.size
    last = x.shape[-1]
    out_shapes = (jax.ShapeDtypeStruct((1, 1), jnp.float32),
                  jax.ShapeDtypeStruct((1, 1), jnp.float32))
    if n <= (1 << 20):
        # Small inputs: one block over a free 2-D view (no extra HBM copy).
        mat = xf32.reshape(n // last, last)
        mn, mx = pl.pallas_call(
            _minmax_small_kernel, out_shape=out_shapes,
            compiler_params=pltpu.CompilerParams(vmem_limit_bytes=32 * 2 ** 20),
        )(mat)
        return mn[0, 0], mx[0, 0]
    # Large inputs: gridded accumulator reduction with ~1 MiB tiles.
    flat = xf32.reshape(-1)
    rows = -(-n // 128)
    tile = 2048
    rows_p = _round_up(rows, tile)
    flat = jnp.pad(flat, (0, rows_p * 128 - n), mode="edge")   # min/max-neutral
    mat = flat.reshape(rows_p, 128)
    mn, mx = pl.pallas_call(
        _minmax_grid_kernel,
        out_shape=out_shapes,
        grid_spec=pltpu.PrefetchScalarGridSpec(
            num_scalar_prefetch=0,
            grid=(rows_p // tile,),
            in_specs=[pl.BlockSpec((tile, 128), lambda i: (i, 0))],
            out_specs=(pl.BlockSpec((1, 1), lambda i: (0, 0)),
                       pl.BlockSpec((1, 1), lambda i: (0, 0))),
        ),
        compiler_params=pltpu.CompilerParams(
            dimension_semantics=("arbitrary",),
            vmem_limit_bytes=32 * 2 ** 20,
        ),
    )(mat)
    return mn[0, 0], mx[0, 0]


# --------------------------------------------------------------------------- #
# Miniature SD-VAE (same forward interface as the PyTorch wrapper).
# --------------------------------------------------------------------------- #
def _encode(params, x_nchw, *, latent_channels):
    h = jnp.transpose(x_nchw, (0, 2, 3, 1)).astype(jnp.float32)      # -> NHWC
    w, b = params["e_conv_in"]
    h = conv2d_pallas(h, w, b, pads=(1, 1, 1, 1), act=True)
    for name in ("e_down1", "e_down2", "e_down3"):
        w, b = params[name]
        h = conv2d_stride2_pallas(h, w, b, act=True)
    w, b = params["e_latent"]            # e_conv_out with quant_conv folded in
    h = conv2d_pallas(h, w, b, pads=(1, 1, 1, 1), act=False, out_dtype=jnp.float32)
    mean = h[..., :latent_channels]      # latent_dist.mean
    return jnp.transpose(mean, (0, 3, 1, 2))                          # -> NCHW


def _decode(params, z_nchw):
    h = jnp.transpose(z_nchw, (0, 2, 3, 1)).astype(jnp.float32)      # -> NHWC
    wq, bq = params["post_quant"]        # tiny 1x1 on the 4-channel latent (XLA)
    h = jnp.einsum("nhwc,co->nhwo", h, wq[0, 0]) + bq
    w, b = params["d_conv_in"]
    h = conv2d_pallas(h, w, b, pads=(1, 1, 1, 1), act=True)
    for name in ("d_up1", "d_up2", "d_up3"):
        w4, b4 = params[name]
        h = upsample2x_conv_pallas(h, w4, b4, act=True)
    w, b = params["d_conv_out"]
    h = conv2d_pallas(h, w, b, pads=(1, 1, 1, 1), act=False, out_dtype=jnp.bfloat16)
    return jnp.transpose(h.astype(jnp.float32), (0, 3, 1, 2))         # -> NCHW


def _vae_forward(params, x, *, latent_channels):
    mn, mx = pallas_minmax(x)
    z = _encode(params, x, latent_channels=latent_channels)
    recon = _decode(params, z)
    return recon, mn, mx


def _init_conv(key, kh, kw, cin, cout):
    # PyTorch Conv2d default init: U(-k, k), k = 1/sqrt(cin*kh*kw)
    kw_key, b_key = jax.random.split(key)
    k = 1.0 / math.sqrt(cin * kh * kw)
    w = jax.random.uniform(kw_key, (kh, kw, cin, cout), jnp.float32, -k, k)
    b = jax.random.uniform(b_key, (cout,), jnp.float32, -k, k)
    return w, b


class SDVAEWrapperPallas:
    """Pallas/JAX stand-in for SD_VAE_Wrapper. forward(x) -> (recon, 0.0)."""

    def __init__(self, key, latent_channels=4, base=32):
        self.in_channels = 3
        self.latent_channels = latent_channels
        lc = latent_channels
        raw_cfg = [
            ("e_conv_in", 3, base, 3),
            ("e_down1", base, base, 3),
            ("e_down2", base, 2 * base, 3),
            ("e_down3", 2 * base, 2 * base, 3),
            ("e_conv_out", 2 * base, 2 * lc, 3),
            ("quant_conv", 2 * lc, 2 * lc, 1),
            ("post_quant_conv", lc, lc, 1),
            ("d_conv_in", lc, 2 * base, 3),
            ("d_up1", 2 * base, 2 * base, 3),
            ("d_up2", 2 * base, base, 3),
            ("d_up3", base, base, 3),
            ("d_conv_out", base, 3, 3),
        ]
        keys = jax.random.split(key, len(raw_cfg))
        raw = {name: _init_conv(k_, ks, ks, cin, cout)
               for k_, (name, cin, cout, ks) in zip(keys, raw_cfg)}

        params = {"e_conv_in": raw["e_conv_in"]}
        for nm in ("e_down1", "e_down2", "e_down3"):
            w, b = raw[nm]
            params[nm] = (_make_s2d_weights(w), b)
        # quant_conv (1x1) folded exactly into e_conv_out (removes one layer).
        params["e_latent"] = _fuse_conv_1x1(*raw["e_conv_out"], *raw["quant_conv"])
        params["post_quant"] = raw["post_quant_conv"]
        params["d_conv_in"] = raw["d_conv_in"]
        for nm in ("d_up1", "d_up2", "d_up3"):
            params[nm] = _make_subpixel_weights(*raw[nm])
        params["d_conv_out"] = raw["d_conv_out"]
        self.params = params
        self.last_min = None
        self.last_max = None

        self._encode_jit = jax.jit(functools.partial(_encode, latent_channels=lc))
        self._decode_jit = jax.jit(_decode)
        self._forward_jit = jax.jit(functools.partial(_vae_forward, latent_channels=lc))

    def encode(self, x_nchw):
        return self._encode_jit(self.params, x_nchw)

    def decode(self, z_nchw, orig_size=None, noise_strength=0.0):
        return self._decode_jit(self.params, z_nchw)

    def forward(self, x, noise_strength=0.0, minval=0, get_stats=False):
        recon, mn, mx = self._forward_jit(self.params, x)
        self.last_min, self.last_max = mn, mx
        if get_stats:
            return recon, 0.0, {"codebook_mean_dist": 0.0, "codebook_max_dist": 0.0}
        return recon, 0.0


# --------------------------------------------------------------------------- #
if __name__ == "__main__":
    key = jax.random.PRNGKey(0)
    k_params, k_data, k_t1, k_t2, k_t3 = jax.random.split(key, 5)

    def _max_err(a, b):
        return float(jnp.max(jnp.abs(a.astype(jnp.float32) - b.astype(jnp.float32))))

    # ---- kernel self-tests (halo / multi-row-tile, s2d and subpixel remaps) ----
    xt = jax.random.normal(k_t1, (1, 16, 16, 8), jnp.float32)
    wt = jax.random.normal(k_t2, (3, 3, 8, 16), jnp.float32) * 0.1
    bt = jax.random.normal(k_t3, (16,), jnp.float32) * 0.1
    xb = xt.astype(jnp.bfloat16).astype(jnp.float32)
    wb = wt.astype(jnp.bfloat16).astype(jnp.float32)
    dn = ("NHWC", "HWIO", "NHWC")

    ref1 = jax.lax.conv_general_dilated(
        xb, wb, (1, 1), ((1, 1), (1, 1)), dimension_numbers=dn,
        preferred_element_type=jnp.float32, precision=jax.lax.Precision.HIGHEST) + bt
    got1 = conv2d_pallas(xt, wt, bt, pads=(1, 1, 1, 1), act=False,
                         out_dtype=jnp.float32, max_tile_h=8)   # forces 2 row tiles
    tol1 = 3e-2 * (1.0 + float(jnp.max(jnp.abs(ref1))))
    assert _max_err(got1, ref1) < tol1, ("conv", _max_err(got1, ref1))

    ref2 = jax.lax.conv_general_dilated(
        xb, wb, (2, 2), ((1, 1), (1, 1)), dimension_numbers=dn,
        preferred_element_type=jnp.float32, precision=jax.lax.Precision.HIGHEST) + bt
    got2 = conv2d_stride2_pallas(xt, _make_s2d_weights(wt), bt, act=False,
                                 out_dtype=jnp.float32)
    tol2 = 3e-2 * (1.0 + float(jnp.max(jnp.abs(ref2))))
    assert _max_err(got2, ref2) < tol2, ("stride2", _max_err(got2, ref2))

    xup = jnp.repeat(jnp.repeat(xb, 2, axis=1), 2, axis=2)
    ref3 = jax.lax.conv_general_dilated(
        xup, wb, (1, 1), ((1, 1), (1, 1)), dimension_numbers=dn,
        preferred_element_type=jnp.float32, precision=jax.lax.Precision.HIGHEST) + bt
    w4t, b4t = _make_subpixel_weights(wt, bt)
    got3 = upsample2x_conv_pallas(xt, w4t, b4t, act=False, out_dtype=jnp.float32)
    tol3 = 3e-2 * (1.0 + float(jnp.max(jnp.abs(ref3))))
    assert _max_err(got3, ref3) < tol3, ("subpixel", _max_err(got3, ref3))

    # ---- full VAE forward (NCHW 3-channel image, like the PyTorch module) ----
    x = jax.random.normal(k_data, (2, 3, 16, 16), dtype=jnp.float32)
    model = SDVAEWrapperPallas(k_params)
    recon, loss = model.forward(x)
    recon = jax.block_until_ready(recon)
    _ = jax.block_until_ready(model.last_min)
    _ = jax.block_until_ready(model.last_max)

    assert recon.shape == x.shape, (recon.shape, x.shape)
    assert recon.dtype == jnp.float32
    assert loss == 0.0
    assert jnp.allclose(model.last_min, x.min())
    assert jnp.allclose(model.last_max, x.max())
    assert bool(jnp.all(jnp.isfinite(recon)))
    print("KERNEL_OK")
</pallas_src>

<mosaic_0001>
module attributes {stable_mosaic.version = 11 : i64} {
  func.func @_conv_kernel(%arg0: i32, %arg1: i32, %arg2: memref<1x144x16xbf16, #tpu.memory_space<vmem>>, %arg3: memref<1x1x38x16xbf16, #tpu.memory_space<vmem>>, %arg4: memref<144x128xbf16, #tpu.memory_space<vmem>>, %arg5: memref<1x128xf32, #tpu.memory_space<vmem>>, %arg6: memref<1x144x128xf32, #tpu.memory_space<vmem>>, %arg7: memref<144x144xbf16, #tpu.memory_space<vmem>>) attributes {dimension_semantics = [#tpu.dimension_semantics<parallel>, #tpu.dimension_semantics<parallel>], iteration_bounds = array<i64: 1, 2>, scalar_prefetch = 0 : i64, scratch_operands = 1 : i64, tpu.core_type = #tpu.core_type<tc>, window_params = [{transform_indices = @transform_0, window_bounds = array<i64: 1, 144, 16>}, {transform_indices = @transform_1, window_bounds = array<i64: 1, 1, 38, 16>}, {pipeline_mode = #tpu.pipeline_mode<synchronous>, transform_indices = @transform_2, window_bounds = array<i64: 144, 128>}, {pipeline_mode = #tpu.pipeline_mode<synchronous>, transform_indices = @transform_3, window_bounds = array<i64: 1, 128>}, {transform_indices = @transform_4, window_bounds = array<i64: 1, 144, 128>}]} {
    %c0 = arith.constant 0 : index
    %c0_0 = arith.constant 0 : index
    %c0_1 = arith.constant 0 : index
    %0 = vector.load %arg2[%c0, %c0_0, %c0_1] : memref<1x144x16xbf16, #tpu.memory_space<vmem>>, vector<1x144x16xbf16>
    %1 = vector.shape_cast %0 : vector<1x144x16xbf16> to vector<144x16xbf16>
    %c0_2 = arith.constant 0 : index
    %c0_3 = arith.constant 0 : index
    %2 = vector.load %arg7[%c0_2, %c0_3] : memref<144x144xbf16, #tpu.memory_space<vmem>>, vector<144x16xbf16>
    tpu.vector_store %arg7[%c0_2, %c0_3], %1 {strides = array<i32>} : memref<144x144xbf16, #tpu.memory_space<vmem>>, vector<144x16xbf16>,
    %c0_4 = arith.constant 0 : index
    %c1 = arith.constant 1 : index
    %c0_5 = arith.constant 0 : index
    %3 = vector.load %arg2[%c0_4, %c1, %c0_5] : memref<1x144x16xbf16, #tpu.memory_space<vmem>>, vector<1x143x16xbf16>
    %4 = vector.shape_cast %3 : vector<1x143x16xbf16> to vector<143x16xbf16>
    %c0_6 = arith.constant 0 : index
    %c16 = arith.constant 16 : index
    %5 = vector.load %arg7[%c0_6, %c16] : memref<144x144xbf16, #tpu.memory_space<vmem>>, vector<143x16xbf16>
    tpu.vector_store %arg7[%c0_6, %c16], %4 {strides = array<i32>} : memref<144x144xbf16, #tpu.memory_space<vmem>>, vector<143x16xbf16>,
    %c0_7 = arith.constant 0 : index
    %c0_8 = arith.constant 0 : index
    %c0_9 = arith.constant 0 : index
    %c0_10 = arith.constant 0 : index
    %6 = vector.load %arg3[%c0_7, %c0_8, %c0_9, %c0_10] : memref<1x1x38x16xbf16, #tpu.memory_space<vmem>>, vector<1x1x1x16xbf16>
    %7 = vector.shape_cast %6 : vector<1x1x1x16xbf16> to vector<1x16xbf16>
    %c143 = arith.constant 143 : index
    %c16_11 = arith.constant 16 : index
    %8 = vector.load %arg7[%c143, %c16_11] : memref<144x144xbf16, #tpu.memory_space<vmem>>, vector<1x16xbf16>
    tpu.vector_store %arg7[%c143, %c16_11], %7 {strides = array<i32>} : memref<144x144xbf16, #tpu.memory_space<vmem>>, vector<1x16xbf16>,
    %c0_12 = arith.constant 0 : index
    %c2 = arith.constant 2 : index
    %c0_13 = arith.constant 0 : index
    %9 = vector.load %arg2[%c0_12, %c2, %c0_13] : memref<1x144x16xbf16, #tpu.memory_space<vmem>>, vector<1x142x16xbf16>
    %10 = vector.shape_cast %9 : vector<1x142x16xbf16> to vector<142x16xbf16>
    %c0_14 = arith.constant 0 : index
    %c32 = arith.constant 32 : index
    %11 = vector.load %arg7[%c0_14, %c32] : memref<144x144xbf16, #tpu.memory_space<vmem>>, vector<142x16xbf16>
    tpu.vector_store %arg7[%c0_14, %c32], %10 {strides = array<i32>} : memref<144x144xbf16, #tpu.memory_space<vmem>>, vector<142x16xbf16>,
    %c0_15 = arith.constant 0 : index
    %c0_16 = arith.constant 0 : index
    %c0_17 = arith.constant 0 : index
    %c0_18 = arith.constant 0 : index
    %12 = vector.load %arg3[%c0_15, %c0_16, %c0_17, %c0_18] : memref<1x1x38x16xbf16, #tpu.memory_space<vmem>>, vector<1x1x2x16xbf16>
    %13 = vector.shape_cast %12 : vector<1x1x2x16xbf16> to vector<2x16xbf16>
    %c142 = arith.constant 142 : index
    %c32_19 = arith.constant 32 : index
    %14 = vector.load %arg7[%c142, %c32_19] : memref<144x144xbf16, #tpu.memory_space<vmem>>, vector<2x16xbf16>
    tpu.vector_store %arg7[%c142, %c32_19], %13 {strides = array<i32>} : memref<144x144xbf16, #tpu.memory_space<vmem>>, vector<2x16xbf16>,
    %c0_20 = arith.constant 0 : index
    %c18 = arith.constant 18 : index
    %c0_21 = arith.constant 0 : index
    %15 = vector.load %arg2[%c0_20, %c18, %c0_21] : memref<1x144x16xbf16, #tpu.memory_space<vmem>>, vector<1x126x16xbf16>
    %16 = vector.shape_cast %15 : vector<1x126x16xbf16> to vector<126x16xbf16>
    %c0_22 = arith.constant 0 : index
    %c48 = arith.constant 48 : index
    %17 = vector.load %arg7[%c0_22, %c48] : memref<144x144xbf16, #tpu.memory_space<vmem>>, vector<126x16xbf16>
    tpu.vector_store %arg7[%c0_22, %c48], %16 {strides = array<i32>} : memref<144x144xbf16, #tpu.memory_space<vmem>>, vector<126x16xbf16>,
    %c0_23 = arith.constant 0 : index
    %c0_24 = arith.constant 0 : index
    %c0_25 = arith.constant 0 : index
    %c0_26 = arith.constant 0 : index
    %18 = vector.load %arg3[%c0_23, %c0_24, %c0_25, %c0_26] : memref<1x1x38x16xbf16, #tpu.memory_space<vmem>>, vector<1x1x18x16xbf16>
    %19 = vector.shape_cast %18 : vector<1x1x18x16xbf16> to vector<18x16xbf16>
    %c126 = arith.constant 126 : index
    %c48_27 = arith.constant 48 : index
    %20 = vector.load %arg7[%c126, %c48_27] : memref<144x144xbf16, #tpu.memory_space<vmem>>, vector<18x16xbf16>
    tpu.vector_store %arg7[%c126, %c48_27], %19 {strides = array<i32>} : memref<144x144xbf16, #tpu.memory_space<vmem>>, vector<18x16xbf16>,
    %c0_28 = arith.constant 0 : index
    %c19 = arith.constant 19 : index
    %c0_29 = arith.constant 0 : index
    %21 = vector.load %arg2[%c0_28, %c19, %c0_29] : memref<1x144x16xbf16, #tpu.memory_space<vmem>>, vector<1x125x16xbf16>
    %22 = vector.shape_cast %21 : vector<1x125x16xbf16> to vector<125x16xbf16>
    %c0_30 = arith.constant 0 : index
    %c64 = arith.constant 64 : index
    %23 = vector.load %arg7[%c0_30, %c64] : memref<144x144xbf16, #tpu.memory_space<vmem>>, vector<125x16xbf16>
    tpu.vector_store %arg7[%c0_30, %c64], %22 {strides = array<i32>} : memref<144x144xbf16, #tpu.memory_space<vmem>>, vector<125x16xbf16>,
    %c0_31 = arith.constant 0 : index
    %c0_32 = arith.constant 0 : index
    %c0_33 = arith.constant 0 : index
    %c0_34 = arith.constant 0 : index
    %24 = vector.load %arg3[%c0_31, %c0_32, %c0_33, %c0_34] : memref<1x1x38x16xbf16, #tpu.memory_space<vmem>>, vector<1x1x19x16xbf16>
    %25 = vector.shape_cast %24 : vector<1x1x19x16xbf16> to vector<19x16xbf16>
    %c125 = arith.constant 125 : index
    %c64_35 = arith.constant 64 : index
    %26 = vector.load %arg7[%c125, %c64_35] : memref<144x144xbf16, #tpu.memory_space<vmem>>, vector<19x16xbf16>
    tpu.vector_store %arg7[%c125, %c64_35], %25 {strides = array<i32>} : memref<144x144xbf16, #tpu.memory_space<vmem>>, vector<19x16xbf16>,
    %c0_36 = arith.constant 0 : index
    %c20 = arith.constant 20 : index
    %c0_37 = arith.constant 0 : index
    %27 = vector.load %arg2[%c0_36, %c20, %c0_37] : memref<1x144x16xbf16, #tpu.memory_space<vmem>>, vector<1x124x16xbf16>
    %28 = vector.shape_cast %27 : vector<1x124x16xbf16> to vector<124x16xbf16>
    %c0_38 = arith.constant 0 : index
    %c80 = arith.constant 80 : index
    %29 = vector.load %arg7[%c0_38, %c80] : memref<144x144xbf16, #tpu.memory_space<vmem>>, vector<124x16xbf16>
    tpu.vector_store %arg7[%c0_38, %c80], %28 {strides = array<i32>} : memref<144x144xbf16, #tpu.memory_space<vmem>>, vector<124x16xbf16>,
    %c0_39 = arith.constant 0 : index
    %c0_40 = arith.constant 0 : index
    %c0_41 = arith.constant 0 : index
    %c0_42 = arith.constant 0 : index
    %30 = vector.load %arg3[%c0_39, %c0_40, %c0_41, %c0_42] : memref<1x1x38x16xbf16, #tpu.memory_space<vmem>>, vector<1x1x20x16xbf16>
    %31 = vector.shape_cast %30 : vector<1x1x20x16xbf16> to vector<20x16xbf16>
    %c124 = arith.constant 124 : index
    %c80_43 = arith.constant 80 : index
    %32 = vector.load %arg7[%c124, %c80_43] : memref<144x144xbf16, #tpu.memory_space<vmem>>, vector<20x16xbf16>
    tpu.vector_store %arg7[%c124, %c80_43], %31 {strides = array<i32>} : memref<144x144xbf16, #tpu.memory_space<vmem>>, vector<20x16xbf16>,
    %c0_44 = arith.constant 0 : index
    %c36 = arith.constant 36 : index
    %c0_45 = arith.constant 0 : index
    %33 = vector.load %arg2[%c0_44, %c36, %c0_45] : memref<1x144x16xbf16, #tpu.memory_space<vmem>>, vector<1x108x16xbf16>
    %34 = vector.shape_cast %33 : vector<1x108x16xbf16> to vector<108x16xbf16>
    %c0_46 = arith.constant 0 : index
    %c96 = arith.constant 96 : index
    %35 = vector.load %arg7[%c0_46, %c96] : memref<144x144xbf16, #tpu.memory_space<vmem>>, vector<108x16xbf16>
    tpu.vector_store %arg7[%c0_46, %c96], %34 {strides = array<i32>} : memref<144x144xbf16, #tpu.memory_space<vmem>>, vector<108x16xbf16>,
    %c0_47 = arith.constant 0 : index
    %c0_48 = arith.constant 0 : index
    %c0_49 = arith.constant 0 : index
    %c0_50 = arith.constant 0 : index
    %36 = vector.load %arg3[%c0_47, %c0_48, %c0_49, %c0_50] : memref<1x1x38x16xbf16, #tpu.memory_space<vmem>>, vector<1x1x36x16xbf16>
    %37 = vector.shape_cast %36 : vector<1x1x36x16xbf16> to vector<36x16xbf16>
    %c108 = arith.constant 108 : index
    %c96_51 = arith.constant 96 : index
    %38 = vector.load %arg7[%c108, %c96_51] : memref<144x144xbf16, #tpu.memory_space<vmem>>, vector<36x16xbf16>
    tpu.vector_store %arg7[%c108, %c96_51], %37 {strides = array<i32>} : memref<144x144xbf16, #tpu.memory_space<vmem>>, vector<36x16xbf16>,
    %c0_52 = arith.constant 0 : index
    %c37 = arith.constant 37 : index
    %c0_53 = arith.constant 0 : index
    %39 = vector.load %arg2[%c0_52, %c37, %c0_53] : memref<1x144x16xbf16, #tpu.memory_space<vmem>>, vector<1x107x16xbf16>
    %40 = vector.shape_cast %39 : vector<1x107x16xbf16> to vector<107x16xbf16>
    %c0_54 = arith.constant 0 : index
    %c112 = arith.constant 112 : index
    %41 = vector.load %arg7[%c0_54, %c112] : memref<144x144xbf16, #tpu.memory_space<vmem>>, vector<107x16xbf16>
    tpu.vector_store %arg7[%c0_54, %c112], %40 {strides = array<i32>} : memref<144x144xbf16, #tpu.memory_space<vmem>>, vector<107x16xbf16>,
    %c0_55 = arith.constant 0 : index
    %c0_56 = arith.constant 0 : index
    %c0_57 = arith.constant 0 : index
    %c0_58 = arith.constant 0 : index
    %42 = vector.load %arg3[%c0_55, %c0_56, %c0_57, %c0_58] : memref<1x1x38x16xbf16, #tpu.memory_space<vmem>>, vector<1x1x37x16xbf16>
    %43 = vector.shape_cast %42 : vector<1x1x37x16xbf16> to vector<37x16xbf16>
    %c107 = arith.constant 107 : index
    %c112_59 = arith.constant 112 : index
    %44 = vector.load %arg7[%c107, %c112_59] : memref<144x144xbf16, #tpu.memory_space<vmem>>, vector<37x16xbf16>
    tpu.vector_store %arg7[%c107, %c112_59], %43 {strides = array<i32>} : memref<144x144xbf16, #tpu.memory_space<vmem>>, vector<37x16xbf16>,
    %c0_60 = arith.constant 0 : index
    %c38 = arith.constant 38 : index
    %c0_61 = arith.constant 0 : index
    %45 = vector.load %arg2[%c0_60, %c38, %c0_61] : memref<1x144x16xbf16, #tpu.memory_space<vmem>>, vector<1x106x16xbf16>
    %46 = vector.shape_cast %45 : vector<1x106x16xbf16> to vector<106x16xbf16>
    %c0_62 = arith.constant 0 : index
    %c128 = arith.constant 128 : index
    %47 = vector.load %arg7[%c0_62, %c128] : memref<144x144xbf16, #tpu.memory_space<vmem>>, vector<106x16xbf16>
    tpu.vector_store %arg7[%c0_62, %c128], %46 {strides = array<i32>} : memref<144x144xbf16, #tpu.memory_space<vmem>>, vector<106x16xbf16>,
    %c0_63 = arith.constant 0 : index
    %c0_64 = arith.constant 0 : index
    %c0_65 = arith.constant 0 : index
    %c0_66 = arith.constant 0 : index
    %48 = vector.load %arg3[%c0_63, %c0_64, %c0_65, %c0_66] : memref<1x1x38x16xbf16, #tpu.memory_space<vmem>>, vector<1x1x38x16xbf16>
    %49 = vector.shape_cast %48 : vector<1x1x38x16xbf16> to vector<38x16xbf16>
    %c106 = arith.constant 106 : index
    %c128_67 = arith.constant 128 : index
    %50 = vector.load %arg7[%c106, %c128_67] : memref<144x144xbf16, #tpu.memory_space<vmem>>, vector<38x16xbf16>
    tpu.vector_store %arg7[%c106, %c128_67], %49 {strides = array<i32>} : memref<144x144xbf16, #tpu.memory_space<vmem>>, vector<38x16xbf16>,
    %c0_68 = arith.constant 0 : index
    %c0_69 = arith.constant 0 : index
    %51 = vector.load %arg7[%c0_68, %c0_69] : memref<144x144xbf16, #tpu.memory_space<vmem>>, vector<144x144xbf16>
    %c0_70 = arith.constant 0 : index
    %c0_71 = arith.constant 0 : index
    %52 = vector.load %arg4[%c0_70, %c0_71] : memref<144x128xbf16, #tpu.memory_space<vmem>>, vector<144x128xbf16>
    %cst = arith.constant dense<0.000000e+00> : vector<144x128xf32>
    %53 = tpu.matmul %51, %52, %cst {dimension_numbers = #tpu.dot_dimension_numbers<[1], [0], [0], [1], [0, 0, 1, 1], [], []>} : vector<144x144xbf16>, vector<144x128xbf16>, vector<144x128xf32> -> vector<144x128xf32>
    %c0_72 = arith.constant 0 : index
    %c0_73 = arith.constant 0 : index
    %54 = vector.load %arg5[%c0_72, %c0_73] : memref<1x128xf32, #tpu.memory_space<vmem>>, vector<1x128xf32>
    %55 = vector.broadcast %54 : vector<1x128xf32> to vector<144x128xf32>
    %56 = arith.addf %53, %55 : vector<144x128xf32>
    %c0_74 = arith.constant 0 : index
    %c0_75 = arith.constant 0 : index
    %c0_76 = arith.constant 0 : index
    %57 = vector.load %arg6[%c0_74, %c0_75, %c0_76] : memref<1x144x128xf32, #tpu.memory_space<vmem>>, vector<1x144x128xf32>
    %58 = vector.shape_cast %57 : vector<1x144x128xf32> to vector<144x128xf32>
    %59 = vector.shape_cast %56 : vector<144x128xf32> to vector<1x144x128xf32>
    tpu.vector_store %arg6[%c0_74, %c0_75, %c0_76], %59 {strides = array<i32>} : memref<1x144x128xf32, #tpu.memory_space<vmem>>, vector<1x144x128xf32>,
    return
  }
  func.func @transform_0(%arg0: i32, %arg1: i32) -> (i32, i32, i32) {
    %c0_i32 = arith.constant 0 : i32
    %c0_i32_0 = arith.constant 0 : i32
    return %arg0, %arg1, %c0_i32 : i32, i32, i32
  }
  func.func @transform_1(%arg0: i32, %arg1: i32) -> (i32, i32, i32, i32) {
    %c0_i32 = arith.constant 0 : i32
    %c0_i32_0 = arith.constant 0 : i32
    %c0_i32_1 = arith.constant 0 : i32
    return %arg0, %arg1, %c0_i32, %c0_i32_0 : i32, i32, i32, i32
  }
  func.func @transform_2(%arg0: i32, %arg1: i32) -> (i32, i32) {
    %c0_i32 = arith.constant 0 : i32
    %c0_i32_0 = arith.constant 0 : i32
    %c0_i32_1 = arith.constant 0 : i32
    return %c0_i32, %c0_i32_0 : i32, i32
  }
  func.func @transform_3(%arg0: i32, %arg1: i32) -> (i32, i32) {
    %c0_i32 = arith.constant 0 : i32
    %c0_i32_0 = arith.constant 0 : i32
    %c0_i32_1 = arith.constant 0 : i32
    return %c0_i32, %c0_i32_0 : i32, i32
  }
  func.func @transform_4(%arg0: i32, %arg1: i32) -> (i32, i32, i32) {
    %c0_i32 = arith.constant 0 : i32
    %c0_i32_0 = arith.constant 0 : i32
    return %arg0, %arg1, %c0_i32 : i32, i32, i32
  }
}

</mosaic_0001>

<bundles_post_ra>
// kernel: tpu_custom_call.1
= control target key start
LH: loop header
LB: loop body
LE: loop exit
PB: predicated region body
PF: predicated region fallthrough
CT: control target
= control target key end

     0   :  { %9 = vsyncpa [#allocation4], 0  ;;  %s3235_s0 = inlined_call_operand.vmem [shape: bf16[1,288,16], index: 0, kind: input, shape index: {}]   ;;  %s3236_s1 = inlined_call_operand.vmem [shape: bf16[1,2,38,16], index: 1, kind: input, shape index: {}]   ;;  %s3237_s2 = inlined_call_operand.vmem [shape: bf16[144,128], index: 2, kind: input, shape index: {}]   ;;  %s3238_s3 = inlined_call_operand.vmem [shape: f32[1,128], index: 3, kind: input, shape index: {}]   ;;  %s3239_s4 = inlined_call_operand.hbm [shape: f32[1,288,128], index: 4, kind: output, shape index: {}]  }
   0x1   :  { %11 = vsyncpa [#allocation4 + $0x1], 0  ;;  %s2352_s15 = smov 0   ;;  %s2354_s16 = smov 0  }
   0x2   :  { %s2356_s17 = smov 0   ;;  %s2358_s18 = smov 0  }
   0x3   :  { %s2360_s19 = smov 0   ;;  %s2362_s20 = smov 0  }
   0x4 LB: > { %s1934_s21 = sadd.s32 4294967295, %s2314_s20   ;;  %s1935_s22 = sadd.s32 4294967294, %s2314_s20   ;;  %s2314_s20 = sphi %s2362_s20, %s17_s20   ;;  %s2310_s19 = sphi %s2360_s19, %s3246_s19   ;;  %s2306_s18 = sphi %s2358_s18, %s3245_s18   ;;  %s2302_s17 = sphi %s2356_s17, %s3244_s17   ;;  %s2298_s16 = sphi %s2354_s16, %s3243_s16   ;;  %s2294_s15 = sphi %s2352_s15, %s3242_s15  }
   0x5   : > { %s26_s23 = sadd.s32 1, %s2310_s19  ;;  %s136_s24 = sadd.s32 1, %s2302_s17 }
   0x6   : > { %p27_p0 = scmp.ge.s32.totalorder %s26_s23, 2  ;;  %p146_p1 = scmp.ne.s32.totalorder %s2302_s17, %s2298_s16 }
   0x7   : > { %p147_p2 = scmp.eq.s32.totalorder %s1934_s21, 1  ;;  %p152_p3 = scmp.ne.s32.totalorder %s2298_s16, %s2294_s15 }
   0x8   : > { %s3248_s23 = smov (%p27_p0, %s26_s23), 0  ;;  %p153_p5 = scmp.eq.s32.totalorder %s1935_s22, 1 }
   0x9   : > { %p2392_p4 = por %p147_p2, %p146_p1  ;;  %s132_s26 = ssub.s32 %s2310_s19, %s3248_s23 }
   0xa   : > { %p1938_p6 = scmp.ge.s32.totalorder %s2314_s20, 1  ;;  %p134_p7 = scmp.eq.s32.totalorder %s132_s26, 0 }
   0xb   : > { %p2399_p8 = por %p153_p5, %p152_p3  ;;  %p202_p9 = scmp.lt.s32.totalorder %s2314_s20, 3 }
   0xc   : > { %s2405_s28 = scalar_select %p134_p7, %s2302_s17, %s136_s24  }
   0xd   : > { %p203_p10 = pnand %p1938_p6, %p202_p9 }
   0xe   : > { %s241_s29 = smul.u32 (!%p203_p10), 18, %s2306_s18  ;;  %vm600_vm0 = vcmask (!%p203_p10), 1046528   ;;  %v2202_v0 = vld [vmem:[%s3237_s2] sm:$0xff] (!%p203_p10)   ;;  %v2316_v1 = vmov (!%p203_p10), 0   ;;  %vm1056_vm1 = vcmask (!%p203_p10), 1045504   ;;  %s2317_s10 = smov (!%p203_p10), 48  }
   0xf   : > { %206 = sbr.rel (%p203_p10) target bundleno = 520 (0x208), region = 36  ;;  %1695 = vmatprep.subr.bf16.mxu0 (!%p203_p10), %v2316_v1  ;;  %2053 = vmatprep.subr.bf16.mxu1 (!%p203_p10), %v2316_v1  ;;  %vm407_vm2 = vsmask.f32 (!%p203_p10), 7424  ;;  %s2318_s11 = smov (!%p203_p10), 32   ;;  %vm850_vm3 = vsmask.f32 (!%p203_p10), 6400 }
  0x10   : > { %p244_p11 = scmp.lt.s32.totalorder (!%p203_p10), %s241_s29, 35  ;;  %1696 = vmatpush1.bf16.msra.mxu0 (!%p203_p10), %v2202_v0  ;;  %2062 = vmatpush1.bf16.msra.mxu1 (!%p203_p10), %v2202_v0  ;;  %p253_p12 = scmp.lt.s32.totalorder (!%p203_p10), %s2306_s18, 1  ;;  %vm1306_vm4 = vsmask.f32 (!%p203_p10), 5376  ;;  %vm334_vm5 = vcmask (!%p203_p10), 130048   ;;  %vm1512_vm6 = vcmask (!%p203_p10), 1044480  }
  0x11   : > { %1697 = vmatprep.subr.bf16.mxu0 (!%p203_p10), %v2316_v1  ;;  %2054 = vmatprep.subr.bf16.mxu1 (!%p203_p10), %v2316_v1  ;;  %s2319_s12 = smov (!%p203_p10), 80   ;;  %s2320_s13 = smov (!%p203_p10), 16   ;;  %vm1539_vm7 = vcmask (!%p203_p10), 126976   ;;  %vm1567_vm8 = vcmask (!%p203_p10), 130053   ;;  %vm506_vm9 = vcmask (!%p203_p10), 261248   ;;  %vm645_vm10 = vcmask (!%p203_p10), 392448  }
  0x12   : > { %s2321_s14 = smov (!%p203_p10), 64   ;;  %s2322_s21 = smov (!%p203_p10), 96   ;;  %vm761_vm11 = vcmask (!%p203_p10), 523648   ;;  %vm946_vm12 = vcmask (!%p203_p10), 654848   ;;  %vm1096_vm13 = vcmask (!%p203_p10), 786048   ;;  %vm1212_vm14 = vcmask (!%p203_p10), 917248  }
  0x13   : > { %s2323_s24 = smov (!%p203_p10), 112   ;;  %vm1219_vm15 = vcmask (!%p203_p10), 915200  }
  0x16   : > { %s3250_s29 = smov (!%p244_p11, %s241_s29), 35 }
  0x17   : > { %s1939_s6 = sshll.u32 %s3250_s29, 2 }
  0x18   : > { %s2416_s9 = scalar_lea.vmem %s3235_s0, %s1939_s6 }
  0x19   : > { %v2421_v2 = vld [vmem:[%s2416_s9 + $0x38] sm:$0xff]   ;;  %v2424_v3 = vld [vmem:[%s2416_s9 + $0x40] sm:$0xff]   ;;  %v2429_v6 = vld [vmem:[%s2416_s9 + $0x30] sm:$0xff]   ;;  %s254_s22 = scalar_select %p253_p12, %s2306_s18, 1 }
  0x1a   : > { %v733_v4 = vrot.slane %v2421_v2, 1  ;;  %v735_v5 = vrot.slane %v2424_v3, 1  ;;  %v2432_v7 = vld [vmem:[%s2416_s9 + $0x38] sm:$0xff]   ;;  %v612_v9 = vrot.slane %v2429_v6, 1  ;;  %v2445_v12 = vld [vmem:[%s2416_s9 + $0x40] sm:$0xff]   ;;  %v2458_v17 = vld [vmem:[%s2416_s9 + $0x8] sm:$0xff]  }
  0x1b   : > { %v614_v10 = vrot.slane %v2432_v7, 1  ;;  %v2442_v11 = vld [vmem:[%s2416_s9 + $0x38] sm:$0xff]   ;;  %v1070_v15 = vrot.slane %v2445_v12, 2  ;;  %v2144_v16 = vld [vmem:[%s2416_s9] sm:$0xfe]   ;;  %v2467_v20 = vld [vmem:[%s2416_s9 + $0x10] sm:$0xff]  }
  0x1c   : > { %v736_v8 = vsel %vm600_vm0, %v733_v4, %v735_v5  ;;  %v1068_v14 = vrot.slane %v2442_v11, 2  ;;  %v601_v19 = vrot.slane %v2144_v16, 1  ;;  %v602_v21 = vrot.slane %v2458_v17, 1  ;;  %v2146_v22 = vld [vmem:[%s2416_s9 + $0x8] sm:$0xfe]   ;;  %v2148_v23 = vld [vmem:[%s2416_s9 + $0x30] sm:$0xff]  }
  0x1d   : > { %749 = vrot.lane.b32.xlu0 %v736_v8, %s2317_s10  ;;  %v615_v13 = vsel %vm600_vm0, %v612_v9, %v614_v10  ;;  %v723_v24 = vrot.slane %v2467_v20, 1  ;;  %v2475_v25 = vld [vmem:[%s2416_s9 + $0x38] sm:$0xff]   ;;  %v722_v27 = vrot.slane %v2146_v22, 1  ;;  %v456_v28 = vshll.u32 %v2148_v23, 16  ;;  %v2481_v30 = vld [vmem:[%s2416_s9 + $0x10] sm:$0xff]   ;;  %v2152_v32 = vld [vmem:[%s2416_s9] sm:$0xff]  }
  0x1e   : > { %630 = vrot.lane.b32.xlu1 %v615_v13, %s2318_s11  ;;  %v1071_v18 = vsel %vm1056_vm1, %v1068_v14, %v1070_v15  ;;  %v603_v26 = vsel %vm600_vm0, %v601_v19, %v602_v21  ;;  %v460_v29 = vshrl.u32 %v2148_v23, 16  ;;  %v464_v31 = vshll.u32 %v2475_v25, 16  ;;  %v2150_v37 = vld [vmem:[%s2416_s9 + $0x8] sm:$0xfc]   ;;  %v2155_v49 = vld [vmem:[%s2416_s9 + $0x10] sm:$0xff]   ;;  %v2156_v50 = vld [vmem:[%s2416_s9 + $0x38] sm:$0xff]  }
  0x1f   : > { %v724_v33 = vsel %vm600_vm0, %v722_v27, %v723_v24  ;;  %v2489_v34 = vrot.slane %v456_v28, 1  ;;  %v1058_v35 = vrot.slane %v2481_v30, 2  ;;  %v2494_v38 = vld [vmem:[%s2416_s9 + $0x8] sm:$0xff]   ;;  %v1057_v40 = vrot.slane %v2150_v37, 2  ;;  %v2157_v55 = vld [vmem:[%s2416_s9 + $0x40] sm:$0xff]   ;;  %v2512_v59 = vld [vmem:[%s2416_s9 + $0x18] sm:$0xff]  }
  0x20   : > { %v466_v36 = vrot.slane %v464_v31, 1  ;;  %v409_v41 = vshrl.u32 %v2152_v32, 16  ;;  %v411_v42 = vshll.u32 %v2152_v32, 16  ;;  %v416_v43 = vshll.u32 %v2494_v38, 16  ;;  %v2154_v48 = vld [vmem:[%s2416_s9 + $0x8] sm:$0xfe]  }
  0x21   : > { %1084 = vrot.lane.b32.xlu0 %v1071_v18, %s2319_s12  ;;  %v462_v39 = vor.u32 %v460_v29, %v2489_v34  ;;  %v1059_v45 = vsel %vm1056_vm1, %v1057_v40, %v1058_v35  ;;  %v852_v52 = vshrl.u32 %v2154_v48, 16  ;;  %v855_v53 = vshll.u32 %v2154_v48, 16  ;;  %v2517_v0 = vld [vmem:[%s2416_s9 + $0x40] sm:$0xff]   ;;  %v2158_v23 = vld [vmem:[%s2416_s9 + $0x10] sm:$0xfc]   ;;  %s2072_s26 = smul.u32 20, %s254_s22 }
  0x22   : > { %618 = vrot.lane.b32.xlu1 %v603_v26, %s2318_s11  ;;  %v413_v46 = vrot.slane %v411_v42, 1  ;;  %v2504_v47 = vrot.slane %v416_v43, 1  ;;  %v860_v54 = vshrl.u32 %v2155_v49, 16  ;;  %v863_v56 = vshll.u32 %v2155_v49, 16  ;;  %v2162_v42 = vld [vmem:[%s2416_s9 + $0x10] sm:$0xfc]  }
  0x23   : > { %v467_v44 = vsel %vm407_vm2, %v462_v39, %v466_v36  ;;  %v905_v57 = vshrl.u32 %v2156_v50, 16  ;;  %v908_v58 = vshll.u32 %v2156_v50, 16  ;;  %v854_v61 = vrot.slane %v852_v52, 1  ;;  %v2530_v39 = vld [vmem:[%s2416_s9 + $0x40] sm:$0xff]   ;;  %v2164_v50 = vld [vmem:[%s2416_s9 + $0x28] sm:$0xff]   ;;  %s2616_s5 = scalar_lea.vmem %s3236_s1, %s2072_s26  ;;  %v2636_v3 = vld [vmem:[%s2416_s9 + $0x30] sm:$0xff]  }
  0x24   : > { %v414_v51 = vor.u32 %v413_v46, %v409_v41  ;;  %v857_v62 = vrot.slane %v855_v53, 2  ;;  %v862_v63 = vrot.slane %v860_v54, 1  ;;  %v865_v8 = vrot.slane %v863_v56, 2  ;;  %v2163_v46 = vld [vmem:[%s2416_s9 + $0x18] sm:$0xff]   ;;  %s2324_s26 = smov [#allocation3]  }
  0x25   : > { %491 = vrot.lane.b32.xlu0 %v467_v44, %s2320_s13  ;;  %v907_v13 = vrot.slane %v905_v57, 1  ;;  %v910_v16 = vrot.slane %v908_v58, 2  ;;  %v914_v18 = vshrl.u32 %v2157_v55, 16  ;;  %v917_v22 = vshll.u32 %v2157_v55, 16  ;;  %s2240_s29 = sshll.u32 %s2324_s26, 4  ;;  %s2241_s29 = int_to_ptr.vmem [resolvable:$false] %s2240_s29 }
  0x26   : > { %737 = vrot.lane.b32.xlu1 %v724_v33, %s2317_s10  ;;  %v419_v60 = vsel %vm407_vm2, %v414_v51, %v2504_v47  ;;  %v858_v19 = vor.u32 %v857_v62, %v854_v61  ;;  %v1179_v26 = vrot.slane %v2512_v59, 2  ;;  %v2522_v27 = vor.u32 %v865_v8, %v862_v63  ;;  %v2547_v51 = vld [vmem:[%s2416_s9 + $0x10] sm:$0xff]   ;;  %s2242_s30 = scalar_lea.vmem %s2241_s29, 4608 }
  0x27   : > { %v916_v28 = vrot.slane %v914_v18, 1  ;;  %v1189_v29 = vrot.slane %v2517_v0, 2  ;;  %v2525_v31 = vor.u32 %v910_v16, %v907_v13  ;;  %v919_v32 = vrot.slane %v917_v22, 2  ;;  %v2557_v63 = vld [vmem:[%s2416_s9 + $0x10] sm:$0xff]   ;;  %v2568_v18 = vld [vmem:[%s2416_s9 + $0x40] sm:$0xff]  }
  0x28   : > { %v1178_v33 = vrot.slane %v2158_v23, 2  ;;  %v867_v37 = vsel %vm850_vm3, %v858_v19, %v2522_v27  ;;  %v468_v40 = vshrl.u32 %v2475_v25, 16  ;;  %v1308_v49 = vshrl.u32 %v2162_v42, 16 }
  0x29   : > { %479 = vrot.lane.b32.xlu0 %v419_v60, %s2320_s13  ;;  %v2534_v41 = vor.u32 %v919_v32, %v916_v28  ;;  %v1311_v25 = vshll.u32 %v2162_v42, 16  ;;  %v1316_v53 = vshrl.u32 %v2163_v46, 16  ;;  %v1319_v54 = vshll.u32 %v2163_v46, 16  ;;  %v2171_v42 = vld [vmem:[%s2416_s9 + $0x30] sm:$0xff]  }
  0x2a   : > { %1072 = vrot.lane.b32.xlu1 %v1059_v45, %s2319_s12  ;;  %v1180_v43 = vsel %vm1056_vm1, %v1178_v33, %v1179_v26  ;;  %v470_v44 = vor.u32 %v468_v40, %v466_v36  ;;  %v472_v45 = vshll.u32 %v2530_v39, 16  ;;  %v420_v36 = vshrl.u32 %v2494_v38, 16  ;;  %v2582_v33 = vld [vmem:[%s2416_s9 + $0x28] sm:$0xff]   ;;  %v2587_v40 = vld [vmem:[%s2416_s9 + $0x30] sm:$0xff]  }
  0x2b   : > { %v921_v48 = vsel %vm850_vm3, %v2525_v31, %v2534_v41  ;;  %v1310_v55 = vrot.slane %v1308_v49, 2  ;;  %v1313_v56 = vrot.slane %v1311_v25, 3  ;;  %v448_v57 = vshll.u32 %v2164_v50, 16 }
  0x2c   : > { %v2550_v52 = vrot.slane %v472_v45, 1  ;;  %v452_v58 = vshrl.u32 %v2164_v50, 16  ;;  %v1318_v61 = vrot.slane %v1316_v53, 2  ;;  %v1321_v62 = vrot.slane %v1319_v54, 3  ;;  %v2610_v50 = vld [vmem:[%s2416_s9 + $0x18] sm:$0xff]  }
  0x2d   : > { %934 = vrot.lane.b32.xlu0 %v921_v48, %s2321_s14  ;;  %v1314_v38 = vor.u32 %v1313_v56, %v1310_v55  ;;  %v2559_v8 = vrot.slane %v448_v57, 1  ;;  %v424_v13 = vshll.u32 %v2547_v51, 16  ;;  %v422_v22 = vor.u32 %v420_v36, %v2504_v47 }
  0x2e   : > { %922 = vrot.lane.b32.xlu1 %v867_v37, %s2321_s14  ;;  %v475_v60 = vsel %vm407_vm2, %v470_v44, %v2550_v52  ;;  %v2565_v16 = vor.u32 %v1321_v62, %v1318_v61  ;;  %v604_v32 = vrot.slane %v2557_v63, 1  ;;  %v616_v47 = vrot.slane %v2568_v18, 1  ;;  %v2172_v44 = vld [vmem:[%s2416_s9 + $0x18] sm:$0xff]   ;;  %v2203_v63 = vld [vmem:[%s3237_s2 + $0x8] sm:$0xff]  }
  0x2f   : > { %v454_v19 = vor.u32 %v452_v58, %v2559_v8  ;;  %v2573_v23 = vrot.slane %v424_v13, 1  ;;  %v896_v45 = vshrl.u32 %v2171_v42, 16  ;;  %v899_v46 = vshll.u32 %v2171_v42, 16  ;;  %v2179_v61 = vld [vmem:[%s2416_s9 + $0x38] sm:$0xff]   ;;  %v2180_v13 = vld [vmem:[%s2416_s9 + $0x20] sm:$0xff]   ;;  %1698 = vmatpush1.bf16.msra.mxu0 %v2203_v63  ;;  %2063 = vmatpush1.bf16.msra.mxu1 %v2203_v63 }
  0x30   : > { %v1323_v28 = vsel %vm1306_vm4, %v1314_v38, %v2565_v16  ;;  %v617_v48 = vsel %vm600_vm0, %v614_v10, %v616_v47  ;;  %v610_v49 = vrot.slane %v2582_v33, 1  ;;  %v731_v25 = vrot.slane %v2587_v40, 1  ;;  %1699 = vmatprep.subr.bf16.mxu0 %v2316_v1  ;;  %2055 = vmatprep.subr.bf16.mxu1 %v2316_v1  ;;  %v2217_v63 = vld [vmem:[%s2416_s9 + $0x38] sm:$0xff]   ;;  %v2214_v18 = vld [vmem:[%s2616_s5 + $0x10] ss:$0 sps:$4 sm:$0x33]  }
  0x31   : > { %1203 = vrot.lane.b32.xlu0 %v1189_v29, %s2322_s21  ;;  %v459_v37 = vsel %vm407_vm2, %v454_v19, %v2489_v34  ;;  %v605_v34 = vsel %vm600_vm0, %v602_v21, %v604_v32  ;;  %v898_v17 = vrot.slane %v896_v45, 1  ;;  %v901_v21 = vrot.slane %v899_v46, 2  ;;  %342 = vst.msk [vmem:[#allocation2 + $0x70] sm:$0xff] %vm334_vm5, %v2217_v63 }
  0x32   : > { %1191 = vrot.lane.b32.xlu1 %v1180_v43, %s2322_s21  ;;  %v427_v43 = vsel %vm407_vm2, %v422_v22, %v2573_v23  ;;  %v869_v53 = vshrl.u32 %v2172_v44, 16  ;;  %v872_v54 = vshll.u32 %v2172_v44, 16  ;;  %v613_v7 = vsel %vm600_vm0, %v610_v49, %v612_v9  ;;  %v2649_v9 = vld [vmem:[%s2416_s9 + $0x18] sm:$0xff]  }
  0x33   : > { %v725_v10 = vrot.slane %v2610_v50, 1  ;;  %v734_v56 = vsel %vm600_vm0, %v731_v25, %v733_v4  ;;  %v2633_v57 = vor.u32 %v901_v21, %v898_v17  ;;  %v2652_v4 = vld [vmem:[%s2416_s9 + $0x20] sm:$0xff]   ;;  %v1060_v38 = vrot.slane %v2649_v9, 2  ;;  %v2219_v9 = vld [vmem:[%s2416_s9 + $0x28] sm:$0xff]  }
  0x34   : > { %v871_v36 = vrot.slane %v869_v53, 1  ;;  %v874_v55 = vrot.slane %v872_v54, 2  ;;  %v1181_v19 = vrot.slane %v2652_v4, 2  ;;  %v1352_v22 = vshrl.u32 %v2179_v61, 16  ;;  %v2695_v53 = vld [vmem:[%s2416_s9 + $0x18] sm:$0xff]   ;;  %340 = vst.msk [vmem:[#allocation2 + $0x50] sm:$0xff] %vm334_vm5, %v2219_v9 }
  0x35   : > { %1369 = vrot.lane.b32.xlu0 %v1323_v28, %s2323_s24  ;;  %v726_v2 = vsel %vm600_vm0, %v723_v24, %v725_v10  ;;  %v912_v58 = vsel %vm850_vm3, %v2633_v57, %v2525_v31  ;;  %v1355_v28 = vshll.u32 %v2179_v61, 16  ;;  %v1061_v11 = vsel %vm1056_vm1, %v1058_v35, %v1060_v38  ;;  %v2698_v54 = vld [vmem:[%s2416_s9 + $0x18] sm:$0xff]   ;;  %v2201_v9 = vld [vmem:[%s2616_s5 + $0x8] sm:$0xff]  }
  0x36   : > { %493 = vrot.lane.b32.xlu1 %v475_v60, %s2320_s13  ;;  %v2646_v6 = vor.u32 %v874_v55, %v871_v36  ;;  %v1066_v60 = vrot.slane %v2636_v3, 2  ;;  %v1328_v44 = vshll.u32 %v2180_v13, 16  ;;  %v1354_v45 = vrot.slane %v1352_v22, 2 }
  0x37   : > { %v1357_v46 = vrot.slane %v1355_v28, 3  ;;  %v428_v36 = vshrl.u32 %v2547_v51, 16 }
  0x38   : > { %v876_v24 = vsel %vm850_vm3, %v2522_v27, %v2646_v6  ;;  %v1069_v31 = vsel %vm1056_vm1, %v1066_v60, %v1068_v14  ;;  %v2677_v27 = vld [vmem:[%s2416_s9 + $0x38] sm:$0xff]   ;;  %v1325_v14 = vshrl.u32 %v2180_v13, 16  ;;  %v1330_v21 = vrot.slane %v1328_v44, 3  ;;  %v2198_v13 = vld [vmem:[%s2416_s9 + $0x30] sm:$0xff]  }
  0x39   : > { %481 = vrot.lane.b32.xlu0 %v427_v43, %s2320_s13  ;;  %v2674_v43 = vld [vmem:[%s2616_s5] sm:$0xff]   ;;  %v1187_v30 = vrot.slane %v2677_v27, 2  ;;  %v1358_v59 = vor.u32 %v1357_v46, %v1354_v45  ;;  %v2752_v46 = vld [vmem:[%s2416_s9 + $0x28] sm:$0xff]  }
  0x3a   : > { %489 = vrot.lane.b32.xlu1 %v459_v37, %s2320_s13  ;;  %v1239_v17 = vrot.slane %v2674_v43, 2  ;;  %v1327_v35 = vrot.slane %v1325_v14, 2 }
  0x3b   : > { %v1190_v55 = vsel %vm1056_vm1, %v1187_v30, %v1189_v29  ;;  %v430_v29 = vor.u32 %v428_v36, %v2573_v23  ;;  %v2190_v36 = vld [vmem:[%s2416_s9 + $0x28] sm:$0xff]  }
  0x3d   : > { %632 = vrot.lane.b32.xlu0 %v617_v48, %s2318_s11 }
  0x3e   : > { %620 = vrot.lane.b32.xlu1 %v605_v34, %s2318_s11  ;;  %v1182_v34 = vsel %vm1056_vm1, %v1179_v26, %v1181_v19  ;;  %v2184_v26 = vld [vmem:[%s2416_s9 + $0x20] sm:$0xff]  }
  0x3f   : > { %v878_v61 = vshrl.u32 %v2184_v26, 16 }
  0x41   : > { %628 = vrot.lane.b32.xlu0 %v613_v7, %s2318_s11  ;;  %v2189_v7 = vld [vmem:[%s2416_s9 + $0x20] sm:$0xff]   ;;  %v880_v28 = vrot.slane %v878_v61, 1 }
  0x42   : > { %751 = vrot.lane.b32.xlu1 %v735_v5, %s2317_s10  ;;  %v2176_v5 = vld [vmem:[%s2416_s9 + $0x40] sm:$0xff]   ;;  %v444_v23 = vshrl.u32 %v2189_v7, 16 }
  0x43   : > { %v1361_v20 = vshrl.u32 %v2176_v5, 16  ;;  %v1364_v62 = vshll.u32 %v2176_v5, 16  ;;  %v606_v5 = vrot.slane %v2695_v53, 1 }
  0x45   : > { %739 = vrot.lane.b32.xlu0 %v726_v2, %s2317_s10  ;;  %v1363_v37 = vrot.slane %v1361_v20, 2  ;;  %v1366_v42 = vrot.slane %v1364_v62, 3  ;;  %v432_v2 = vshll.u32 %v2698_v54, 16  ;;  %v881_v20 = vshll.u32 %v2184_v26, 16  ;;  %v2207_v26 = vld [vmem:[%s2416_s9 + $0x30] sm:$0xff]  }
  0x46   : > { %747 = vrot.lane.b32.xlu1 %v734_v56, %s2317_s10  ;;  %v2712_v56 = vor.u32 %v1330_v21, %v1327_v35  ;;  %v440_v62 = vshll.u32 %v2189_v7, 16  ;;  %v2758_v35 = vld [vmem:[%s2616_s5] sm:$0xff]   ;;  %341 = vst.msk [vmem:[#allocation2 + $0x60] sm:$0xff] %vm334_vm5, %v2207_v26  ;;  %v2213_v26 = vld [vmem:[%s3237_s2 + $0x28] sm:$0xff]  }
  0x47   : > { %v1367_v48 = vor.u32 %v1366_v42, %v1363_v37  ;;  %v883_v37 = vrot.slane %v881_v20, 2  ;;  %v1343_v42 = vshrl.u32 %v2198_v13, 16  ;;  %v2188_v21 = vld [vmem:[%s2616_s5] sm:$0xff]   ;;  %v1183_v20 = vrot.slane %v2752_v46, 2 }
  0x48   : > { %v1332_v0 = vsel %vm1306_vm4, %v2565_v16, %v2712_v56  ;;  %v2736_v16 = vrot.slane %v440_v62, 1  ;;  %v2769_v7 = vld [vmem:[%s2416_s9 + $0x20] sm:$0xff]   ;;  %v1421_v62 = vshrl.u32 %v2188_v21, 16 }
  0x49   : > { %924 = vrot.lane.b32.xlu0 %v876_v24, %s2321_s14  ;;  %v1368_v51 = vsel %vm1306_vm4, %v1358_v59, %v1367_v48  ;;  %v2726_v24 = vrot.slane %v432_v2, 1  ;;  %v1345_v14 = vrot.slane %v1343_v42, 2  ;;  %v2749_v45 = vor.u32 %v883_v37, %v880_v28  ;;  %v2210_v2 = vld [vmem:[%s2416_s9] sm:$0xff]   ;;  %v2807_v42 = vld [vmem:[%s2416_s9 + $0x28] sm:$0xff]  }
  0x4a   : > { %932 = vrot.lane.b32.xlu1 %v912_v58, %s2321_s14  ;;  %v2717_v58 = vld [vmem:[%s2416_s9 + $0x20] sm:$0xff]   ;;  %335 = vst.msk [vmem:[#allocation2] sm:$0xff] %vm334_vm5, %v2210_v2  ;;  %v476_v28 = vshrl.u32 %v2530_v39, 16  ;;  %v1184_v37 = vsel %vm1056_vm1, %v1181_v19, %v1183_v20  ;;  %v2220_v2 = vld [vmem:[%s2416_s9 + $0x8] sm:$0xff]  }
  0x4b   : > { %v727_v22 = vrot.slane %v2717_v58, 1  ;;  %v885_v61 = vsel %vm850_vm3, %v2646_v6, %v2749_v45  ;;  %v782_v6 = vrot.slane %v2758_v35, 1  ;;  %336 = vst.msk [vmem:[#allocation2 + $0x10] sm:$0xff] %vm334_vm5, %v2220_v2  ;;  %v2226_v58 = vld [vmem:[%s2416_s9 + $0x40] sm:$0xff]  }
  0x4c   : > { %v2230_v2 = vld [vmem:[%s2616_s5] sm:$0xff]  }
  0x4d   : > { %1074 = vrot.lane.b32.xlu0 %v1061_v11, %s2319_s12  ;;  %v1346_v11 = vshll.u32 %v2198_v13, 16  ;;  %v2193_v13 = vld [vmem:[%s2416_s9 + $0x28] sm:$0xff]  }
  0x4e   : > { %1082 = vrot.lane.b32.xlu1 %v1069_v31, %s2319_s12  ;;  %v607_v31 = vsel %vm600_vm0, %v604_v32, %v606_v5  ;;  %v435_v32 = vsel %vm407_vm2, %v430_v29, %v2726_v24  ;;  %v1337_v29 = vshll.u32 %v2190_v36, 16 }
  0x4f   : > { %v1348_v44 = vrot.slane %v1346_v11, 3  ;;  %v2211_v11 = vld [vmem:[%s3237_s2 + $0x20] sm:$0xff]  }
  0x50   : > { %v1339_v19 = vrot.slane %v1337_v29, 3  ;;  %v2222_v29 = vld [vmem:[%s2416_s9 + $0x10] sm:$0xf8]  }
  0x51   : > { %1381 = vrot.lane.b32.xlu0 %v1367_v48, %s2323_s24  ;;  %v2205_v48 = vld [vmem:[%s3237_s2 + $0x10] sm:$0xff]   ;;  %v2761_v50 = vor.u32 %v1348_v44, %v1345_v14  ;;  %v478_v44 = vor.u32 %v476_v28, %v2550_v52 }
  0x52   : > { %1193 = vrot.lane.b32.xlu1 %v1182_v34, %s2322_s21  ;;  %v728_v34 = vsel %vm600_vm0, %v725_v10, %v727_v22  ;;  %v446_v10 = vor.u32 %v444_v23, %v2736_v16  ;;  %1700 = vmatpush1.bf16.msra.mxu0 %v2205_v48  ;;  %v1423_v23 = vrot.slane %v1421_v62, 2 }
  0x53   : > { %2064 = vmatpush1.bf16.msra.mxu1 %v2205_v48  ;;  %1701 = vmatprep.subr.bf16.mxu0 %v2316_v1  ;;  %v2194_v48 = vld [vmem:[%s2616_s5] sm:$0xff]  }
  0x54   : > { %2056 = vmatprep.subr.bf16.mxu1 %v2316_v1 }
  0x55   : > { %1201 = vrot.lane.b32.xlu0 %v1190_v55, %s2322_s21  ;;  %v2775_v55 = vsel %vm407_vm2, %v446_v10, %v2559_v8  ;;  %v2208_v8 = vld [vmem:[%s3237_s2 + $0x18] sm:$0xff]   ;;  %v729_v10 = vrot.slane %v2807_v42, 1 }
  0x56   : > { %1244 = vrot.lane.b32.xlu1 %v1239_v17, %s2322_s21  ;;  %1702 = vmatpush1.bf16.msra.mxu0 %v2208_v8 }
  0x57   : > { %2065 = vmatpush1.bf16.msra.mxu1 %v2208_v8  ;;  %1703 = vmatprep.subr.bf16.mxu0 %v2316_v1  ;;  %v732_v35 = vsel %vm600_vm0, %v729_v10, %v731_v25 }
  0x58   : > { %2057 = vmatprep.subr.bf16.mxu1 %v2316_v1 }
  0x59   : > { %1371 = vrot.lane.b32.xlu0 %v1332_v0, %s2323_s24  ;;  %v1424_v0 = vshll.u32 %v2188_v21, 16 }
  0x5a   : > { %1379 = vrot.lane.b32.xlu1 %v1368_v51, %s2323_s24  ;;  %v2781_v51 = vsel %vm1306_vm4, %v2761_v50, %v1358_v59  ;;  %v1334_v59 = vshrl.u32 %v2190_v36, 16  ;;  %1704 = vmatpush1.bf16.msra.mxu0 %v2211_v11  ;;  %v2215_v36 = vld [vmem:[%s3237_s2 + $0x30] sm:$0xff]  }
  0x5b   : > { %v1426_v39 = vrot.slane %v1424_v0, 3  ;;  %2066 = vmatpush1.bf16.msra.mxu1 %v2211_v11  ;;  %1705 = vmatprep.subr.bf16.mxu0 %v2316_v1  ;;  %v971_v0 = vshrl.u32 %v2194_v48, 16  ;;  %v2224_v11 = vld [vmem:[%s2416_s9 + $0x10] sm:$0xff]  }
  0x5c   : > { %v1336_v4 = vrot.slane %v1334_v59, 2  ;;  %2058 = vmatprep.subr.bf16.mxu1 %v2316_v1  ;;  %v974_v59 = vshll.u32 %v2194_v48, 16  ;;  %337 = vst.msk [vmem:[#allocation2 + $0x20] sm:$0xff] %vm334_vm5, %v2224_v11  ;;  %v1524_v48 = vrot.slane %v2226_v58, 3 }
  0x5d   : > { %483 = vrot.lane.b32.xlu0 %v435_v32, %s2320_s13  ;;  %v890_v32 = vshll.u32 %v2193_v13, 16  ;;  %v2839_v52 = vor.u32 %v1426_v39, %v1423_v23  ;;  %v2868_v23 = vld [vmem:[%s2416_s9 + $0x38] sm:$0xff]   ;;  %v730_v39 = vsel %vm600_vm0, %v727_v22, %v729_v10 }
  0x5e   : > { %622 = vrot.lane.b32.xlu1 %v607_v31, %s2318_s11  ;;  %v1062_v31 = vrot.slane %v2769_v7, 2  ;;  %1706 = vmatpush1.bf16.msra.mxu0 %v2213_v26  ;;  %v1522_v22 = vrot.slane %v2868_v23, 3  ;;  %1540 = vst.msk [vmem:[#allocation2 + $0x68] sm:$0x1f] %vm1539_vm7, %v1524_v48 }
  0x5f   : > { %2067 = vmatpush1.bf16.msra.mxu1 %v2213_v26  ;;  %1707 = vmatprep.subr.bf16.mxu0 %v2316_v1 }
  0x60   : > { %v1063_v14 = vsel %vm1056_vm1, %v1060_v38, %v1062_v31  ;;  %2059 = vmatprep.subr.bf16.mxu1 %v2316_v1 }
  0x61   : > { %936 = vrot.lane.b32.xlu0 %v2534_v41, %s2321_s14  ;;  %v436_v41 = vshrl.u32 %v2698_v54, 16  ;;  %v887_v54 = vshrl.u32 %v2193_v13, 16  ;;  %v2223_v13 = vld [vmem:[%s2416_s9 + $0x18] sm:$0xff]  }
  0x62   : > { %741 = vrot.lane.b32.xlu1 %v728_v34, %s2317_s10  ;;  %v2826_v34 = vld [vmem:[%s2416_s9 + $0x20] sm:$0xff]   ;;  %1708 = vmatpush1.bf16.msra.mxu0 %v2215_v36 }
  0x63   : > { %v438_v21 = vor.u32 %v436_v41, %v2726_v24  ;;  %v889_v38 = vrot.slane %v887_v54, 1  ;;  %v892_v24 = vrot.slane %v890_v32, 2  ;;  %v608_v62 = vrot.slane %v2826_v34, 1  ;;  %2068 = vmatpush1.bf16.msra.mxu1 %v2215_v36  ;;  %1709 = vmatprep.subr.bf16.mxu0 %v2316_v1  ;;  %v2227_v32 = vld [vmem:[%s2416_s9 + $0x20] sm:$0xff]  }
  0x64   : > { %v1514_v41 = vrot.slane %v2223_v13, 3  ;;  %2060 = vmatprep.subr.bf16.mxu1 %v2316_v1  ;;  %v1516_v53 = vrot.slane %v2227_v32, 3 }
  0x65   : > { %785 = vrot.lane.b32.xlu0 %v782_v6, %s2317_s10  ;;  %v443_v8 = vsel %vm407_vm2, %v438_v21, %v2736_v16  ;;  %v2218_v16 = vld [vmem:[%s3237_s2 + $0x38] sm:$0xff]   ;;  %v2875_v63 = vor.u32 %v892_v24, %v889_v38  ;;  %v2228_v21 = vld [vmem:[%s2416_s9 + $0x40] sm:$0xff]   ;;  %v611_v43 = vsel %vm600_vm0, %v608_v62, %v610_v49 }
  0x66   : > { %926 = vrot.lane.b32.xlu1 %v885_v61, %s2321_s14  ;;  %v2847_v61 = vor.u32 %v1339_v19, %v1336_v4  ;;  %v2878_v4 = vld [vmem:[%s2416_s9 + $0x28] sm:$0xff]   ;;  %v976_v19 = vrot.slane %v974_v59, 2  ;;  %1710 = vmatpush1.bf16.msra.mxu0 %v2218_v16  ;;  %v2221_v38 = vld [vmem:[%s3237_s2 + $0x40] sm:$0xff]   ;;  %343 = vst.msk [vmem:[#allocation2 + $0x80] sm:$0xff] %vm334_vm5, %v2228_v21 }
  0x67   : > { %v894_v26 = vsel %vm850_vm3, %v2749_v45, %v2875_v63  ;;  %2069 = vmatpush1.bf16.msra.mxu1 %v2218_v16  ;;  %1711 = vmatprep.subr.bf16.mxu0 %v2316_v1  ;;  %v2229_v45 = vld [vmem:[%s2416_s9 + $0x18] sm:$0xff]   ;;  %v1064_v36 = vrot.slane %v2878_v4, 2  ;;  %v2927_v59 = vld [vmem:[%s2616_s5] sm:$0xff]   ;;  %v903_v40 = vsel %vm850_vm3, %v2875_v63, %v2633_v57 }
  0x68   : > { %v1341_v28 = vsel %vm1306_vm4, %v2712_v56, %v2847_v61  ;;  %v973_v56 = vrot.slane %v971_v0, 1  ;;  %2061 = vmatprep.subr.bf16.mxu1 %v2316_v1  ;;  %v1517_v1 = vsel %vm1512_vm6, %v1514_v41, %v1516_v53  ;;  %338 = vst.msk [vmem:[#allocation2 + $0x30] sm:$0xff] %vm334_vm5, %v2229_v45  ;;  %v2200_v16 = vld [vmem:[%s2616_s5] ss:$0 sps:$4 sm:$0x11]   ;;  %v1117_v7 = vrot.slane %v2927_v59, 2 }
  0x69   : > { %1076 = vrot.lane.b32.xlu0 %v1063_v14, %s2319_s12  ;;  %v609_v14 = vsel %vm600_vm0, %v606_v5, %v608_v62  ;;  %v1525_v5 = vsel %vm1512_vm6, %v1522_v22, %v1524_v48  ;;  %1534 = vst.msk [vmem:[#allocation2 + $0x18] sm:$0xff] %vm334_vm5, %v1517_v1  ;;  %v2204_v1 = vld [vmem:[%s2616_s5] ss:$0 sps:$4 sm:$0x11]   ;;  %v1067_v57 = vsel %vm1056_vm1, %v1064_v36, %v1066_v60 }
  0x6a   : > { %1195 = vrot.lane.b32.xlu1 %v1184_v37, %s2322_s21  ;;  %v1513_v37 = vrot.slane %v2222_v29, 3  ;;  %v2915_v24 = vor.u32 %v976_v19, %v973_v56  ;;  %1538 = vst.msk [vmem:[#allocation2 + $0x58] sm:$0xff] %vm334_vm5, %v1525_v5  ;;  %1712 = vmatpush1.bf16.msra.mxu0 %v2221_v38  ;;  %v1559_v29 = vrot.slane %v2230_v2, 3  ;;  %v1065_v56 = vsel %vm1056_vm1, %v1062_v31, %v1064_v36  ;;  %v2206_v2 = vld [vmem:[%s2616_s5 + $0x8] ss:$0 sps:$4 sm:$0x11]  }
  0x6b   : > { %2070 = vmatpush1.bf16.msra.mxu1 %v2221_v38  ;;  %v1432_v19 = vshll.u32 %v2201_v9, 16  ;;  %v2212_v62 = vld [vmem:[%s2616_s5 + $0x8] ss:$0 sps:$4 sm:$0x33]  }
  0x6c   : > { %v1515_v54 = vsel %vm1512_vm6, %v1513_v37, %v1514_v41  ;;  %v2933_v37 = vld [vmem:[%s2616_s5 + $0x8] sm:$0xff]   ;;  %v1429_v41 = vshrl.u32 %v2201_v9, 16  ;;  %1568 = vst.msk [vmem:[#allocation2 + $0x68] sm:$0xe0] %vm1567_vm8, %v1559_v29  ;;  %v1350_v9 = vsel %vm1306_vm4, %v2847_v61, %v2761_v50  ;;  %vm1253_vm8 = vcmask 917254  }
  0x6d   : > { %1446 = vrot.lane.b32.xlu0 %v2839_v52, %s2323_s24  ;;  %1533 = vst.msk [vmem:[#allocation2 + $0x8] sm:$0xff] %vm334_vm5, %v1515_v54  ;;  %v2950_v54 = vld [vmem:[%s2616_s5 + $0x8] sm:$0xff]   ;;  %v1240_v31 = vrot.slane %v2933_v37, 2  ;;  %v1434_v21 = vrot.slane %v1432_v19, 3 }
  0x6e   : > { %495 = vrot.lane.b32.xlu1 %v478_v44, %s2320_s13  ;;  %v2896_v44 = vld [vmem:[%s2416_s9 + $0x30] sm:$0xff]   ;;  %v1560_v32 = vrot.slane %v2950_v54, 3  ;;  %v1431_v48 = vrot.slane %v1429_v41, 2  ;;  %v2209_v50 = vld [vmem:[%s2616_s5 + $0x8] ss:$0 sps:$4 sm:$0x33]  }
  0x6f   : > { %v1185_v0 = vrot.slane %v2896_v44, 2  ;;  %v1241_v38 = vsel %vm1056_vm1, %v1239_v17, %v1240_v31 }
  0x70   : > { %v2986_v5 = vor.u32 %v1434_v21, %v1431_v48 }
  0x71   : > { %1373 = vrot.lane.b32.xlu0 %v1341_v28, %s2323_s24  ;;  %v1186_v58 = vsel %vm1056_vm1, %v1183_v20, %v1185_v0  ;;  %v525_v20 = vshll.u32 %v2200_v16, 16  ;;  %v1188_v3 = vsel %vm1056_vm1, %v1185_v0, %v1187_v30 }
  0x72   : > { %485 = vrot.lane.b32.xlu1 %v443_v8, %s2320_s13  ;;  %v2231_v8 = vld [vmem:[%s2416_s9 + $0x28] sm:$0xff]   ;;  %v1436_v61 = vsel %vm1306_vm4, %v2839_v52, %v2986_v5  ;;  %v783_v52 = vrot.slane %v2206_v2, 1 }
  0x73   : > { %v1518_v13 = vrot.slane %v2231_v8, 3  ;;  %v979_v8 = vshrl.u32 %v2209_v50, 16 }
  0x74   : > { %v1572_v28 = vld [vmem:[#allocation2 + $0x8] sm:$0xff]  ;;  %v784_v49 = vsel %vm600_vm0, %v782_v6, %v783_v52  ;;  %v2235_v6 = vld [vmem:[%s2616_s5 + $0x10] ss:$0 sps:$4 sm:$0x77]   ;;  %vm1390_vm0 = vcmask 1048448  }
  0x75   : > { %624 = vrot.lane.b32.xlu0 %v609_v14, %s2318_s11  ;;  %2040 = vmatprep.mubr.msk.bf16.mxu0 %vm334_vm5, %v1572_v28  ;;  %v1519_v11 = vsel %vm1512_vm6, %v1516_v53, %v1518_v13  ;;  %v2232_v14 = vld [vmem:[%s2416_s9 + $0x20] sm:$0xff]   ;;  %v527_v53 = vrot.slane %v525_v20, 1  ;;  %v981_v16 = vrot.slane %v979_v8, 1  ;;  %v1242_v20 = vrot.slane %v2214_v18, 2 }
  0x76   : > { %743 = vrot.lane.b32.xlu1 %v730_v39, %s2317_s10  ;;  %v2938_v39 = vld [vmem:[%s2416_s9 + $0x30] sm:$0xff]   ;;  %1535 = vst.msk [vmem:[#allocation2 + $0x28] sm:$0xff] %vm334_vm5, %v1519_v11  ;;  %339 = vst.msk [vmem:[#allocation2 + $0x40] sm:$0xff] %vm334_vm5, %v2232_v14  ;;  %v1562_v14 = vrot.slane %v2235_v6, 3  ;;  %s238_s9 = sand.u32 1, %s2298_s16  }
  0x77   : > { %v1520_v12 = vrot.slane %v2938_v39, 3  ;;  %v2216_v11 = vld [vmem:[%s2616_s5 + $0x10] ss:$0 sps:$4 sm:$0x77]   ;;  %v1243_v23 = vsel %vm1056_vm1, %v1240_v31, %v1242_v20  ;;  %v1574_v39 = vld [vmem:[#allocation2 + $0x18] sm:$0xff] }
  0x78   : > { %v1563_v10 = vsel %vm1512_vm6, %v1560_v32, %v1562_v14 }
  0x79   : > { %987 = vrot.lane.b32.xlu0 %v2915_v24, %s2321_s14  ;;  %v1521_v46 = vsel %vm1512_vm6, %v1518_v13, %v1520_v12  ;;  %v660_v13 = vrot.slane %v2204_v1, 1  ;;  %v1523_v42 = vsel %vm1512_vm6, %v1520_v12, %v1522_v22  ;;  %1570 = vst.msk [vmem:[#allocation2 + $0x88] sm:$0xff] %vm334_vm5, %v1563_v10 }
  0x7a   : > { %928 = vrot.lane.b32.xlu1 %v894_v26, %s2321_s14  ;;  %1536 = vst.msk [vmem:[#allocation2 + $0x38] sm:$0xff] %vm334_vm5, %v1521_v46  ;;  %v1561_v26 = vsel %vm1512_vm6, %v1559_v29, %v1560_v32  ;;  %v982_v29 = vshll.u32 %v2209_v50, 16  ;;  %1537 = vst.msk [vmem:[#allocation2 + $0x48] sm:$0xff] %vm334_vm5, %v1523_v42  ;;  %vm1397_vm6 = vcmask 1046400  }
  0x7b   : > { %1569 = vst.msk [vmem:[#allocation2 + $0x78] sm:$0xff] %vm334_vm5, %v1561_v26  ;;  %vm1398_vm7 = vmand %vm1397_vm6, %vm1306_vm4  ;;  %vm1455_vm6 = vcmask 1048453  }
  0x7c   : > { %v984_v28 = vrot.slane %v982_v29, 2 }
  0x7d   : > { %1078 = vrot.lane.b32.xlu0 %v1065_v56, %s2319_s12 }
  0x7e   : > { %1086 = vrot.lane.b32.xlu1 %v1070_v15, %s2319_s12  ;;  %v1582_v15 = vld [vmem:[#allocation2 + $0x58] sm:$0xff]  ;;  %v985_v34 = vor.u32 %v984_v28, %v981_v16  ;;  %v1576_v28 = vld [vmem:[#allocation2 + $0x28] sm:$0xff] }
  0x7f   : > { %2045 = vmatprep.mubr.msk.bf16.mxu1 %vm334_vm5, %v1582_v15  ;;  %v1441_v15 = vshll.u32 %v2216_v11, 16 }
  0x80   : > { %v986_v19 = vsel %vm850_vm3, %v2915_v24, %v985_v34 }
  0x81   : > { %1120 = vrot.lane.b32.xlu0 %v1117_v7, %s2319_s12  ;;  %v1443_v21 = vrot.slane %v1441_v15, 3 }
  0x82   : > { %1197 = vrot.lane.b32.xlu1 %v1186_v58, %s2322_s21  ;;  %v1118_v58 = vrot.slane %v2212_v62, 2  ;;  %v1586_v42 = vld [vmem:[#allocation2 + $0x78] sm:$0xff] }
  0x84   : > { %v1119_v46 = vsel %vm1056_vm1, %v1117_v7, %v1118_v58  ;;  %vm769_vm1 = vcmask 522624  }
  0x85   : > { %1246 = vrot.lane.b32.xlu0 %v1241_v38, %s2322_s21 }
  0x86   : > { %1375 = vrot.lane.b32.xlu1 %v1350_v9, %s2323_s24 }
  0x89   : > { %1448 = vrot.lane.b32.xlu0 %v1436_v61, %s2323_s24 }
  0x8a   : > { %528 = vrot.lane.b32.xlu1 %v527_v53, %s2320_s13 }
  0x8d   : > { %487 = vrot.lane.b32.xlu0 %v2775_v55, %s2320_s13 }
  0x8e   : > { %626 = vrot.lane.b32.xlu1 %v611_v43, %s2318_s11 }
  0x8f   : > { %v750_v45 = vpop.permute.xlu0 %749 }
  0x90   : > { %v631_v17 = vpop.permute.xlu1 %630 }
  0x91   : > { %634 = vrot.lane.b32.xlu0 %v616_v47, %s2318_s11  ;;  %v1438_v47 = vshrl.u32 %v2216_v11, 16 }
  0x92   : > { %661 = vrot.lane.b32.xlu1 %v660_v13, %s2318_s11  ;;  %v1584_v13 = vld [vmem:[#allocation2 + $0x68] sm:$0xff] }
  0x93   : > { %v1085_v41 = vpop.permute.xlu0 %1084  ;;  %v1440_v48 = vrot.slane %v1438_v47, 2 }
  0x94   : > { %v619_v33 = vpop.permute.xlu1 %618 }
  0x95   : > { %745 = vrot.lane.b32.xlu0 %v732_v35, %s2317_s10  ;;  %v1444_v63 = vor.u32 %v1443_v21, %v1440_v48  ;;  %v517_v35 = vld [vmem:[#allocation2 + $0x80] sm:$0xff] }
  0x96   : > { %787 = vrot.lane.b32.xlu1 %v784_v49, %s2317_s10  ;;  %s2071_s10 = smul.u32 144, %s238_s9 }
  0x97   : > { %v492_v55 = vpop.permute.xlu0 %491  ;;  %v1445_v4 = vsel %vm1306_vm4, %v2986_v5, %v1444_v63 }
  0x98   : > { %v738_v56 = vpop.permute.xlu1 %737  ;;  %513 = vst.msk [vmem:[#allocation2 + $0x60] sm:$0xff] %vm506_vm9, %v492_v55  ;;  %s3141_s13 = scalar_lea.vmem [#allocation3], %s2071_s10 }
  0x99   : > { %652 = vst.msk [vmem:[#allocation2 + $0x60] sm:$0xff] %vm645_vm10, %v631_v17  ;;  %930 = vrot.lane.b32.xlu0 %v903_v40, %s2321_s14 }
  0x9a   : > { %768 = vst.msk [vmem:[#allocation2 + $0x60] sm:$0xff] %vm761_vm11, %v750_v45  ;;  %989 = vrot.lane.b32.xlu1 %v986_v19, %s2321_s14  ;;  %s2052_s14 = smul.u32 2304, %s2306_s18  ;;  %s3189_s18 = scalar_lea.sflag [#allocation4], %s238_s9 }
  0x9b   : > { %v480_v24 = vpop.permute.xlu0 %479 }
  0x9c   : > { %v1073_v25 = vpop.permute.xlu1 %1072  ;;  %507 = vst.msk [vmem:[#allocation2] sm:$0xff] %vm506_vm9, %v480_v24  ;;  %s3180_s8 = scalar_lea.hbm %s3239_s4, %s2052_s14 }
  0x9d   : > { %646 = vst.msk [vmem:[#allocation2] sm:$0xff] %vm645_vm10, %v619_v33  ;;  %1080 = vrot.lane.b32.xlu0 %v1067_v57, %s2319_s12 }
  0x9e   : > { %1122 = vrot.lane.b32.xlu1 %v1119_v46, %s2319_s12  ;;  %762 = vst.msk [vmem:[#allocation2] sm:$0xff] %vm761_vm11, %v738_v56  ;;  %v1578_v46 = vld [vmem:[#allocation2 + $0x38] sm:$0xff] }
  0x9f   : > { %v935_v60 = vpop.permute.xlu0 %934 }
  0xa0   : > { %v923_v22 = vpop.permute.xlu1 %922  ;;  %953 = vst.msk [vmem:[#allocation2 + $0x60] sm:$0xff] %vm946_vm12, %v935_v60 }
  0xa1   : > { %947 = vst.msk [vmem:[#allocation2] sm:$0xff] %vm946_vm12, %v923_v22  ;;  %1199 = vrot.lane.b32.xlu0 %v1188_v3, %s2322_s21 }
  0xa2   : > { %1248 = vrot.lane.b32.xlu1 %v1243_v23, %s2322_s21  ;;  %1097 = vst.msk [vmem:[#allocation2] sm:$0xff] %vm1096_vm13, %v1073_v25  ;;  %1103 = vst.msk [vmem:[#allocation2 + $0x60] sm:$0xff] %vm1096_vm13, %v1085_v41  ;;  %s1834_s21 = sshll.u32 %s3141_s13, 4  ;;  %s3182_s21 = int_to_ptr.vmem [resolvable:$true] %s1834_s21 }
  0xa3   : > { %v1204_v27 = vpop.permute.xlu0 %1203  ;;  %s2236_s22 = scalar_lea.vmem %s3182_s21, 2304  ;;  %p2243_p2 = scmp.lt.s32.totalorder %s3182_s21, %s2241_s29 }
  0xa4   : > { %v1192_v36 = vpop.permute.xlu1 %1191  ;;  %1220 = vst.msk [vmem:[#allocation2 + $0x60] sm:$0x3f] %vm1219_vm15, %v1204_v27  ;;  %vm954_vm15 = vcmask 653824   ;;  %p2237_p13 = scmp.ne.s32.totalorder %s3182_s21, %s2236_s22  ;;  %p2244_p3 = scmp.lt.s32.totalorder %s2242_s30, %s2236_s22 }
  0xa5   : > { %1213 = vst.msk [vmem:[#allocation2] sm:$0xff] %vm1212_vm14, %v1192_v36  ;;  %1377 = vrot.lane.b32.xlu0 %v2781_v51, %s2323_s24  ;;  %vm955_vm4 = vmand %vm954_vm15, %vm850_vm3  ;;  %vm994_vm15 = vsmask.f32 7962 }
  0xa6   : > { %1450 = vrot.lane.b32.xlu1 %v1445_v4, %s2323_s24  ;;  %vm516_vm3 = vmand %vm506_vm9, %vm407_vm2  ;;  %vm993_vm2 = vcmask 654854   ;;  %p2238_p0 = pnand %p2237_p13, %p2392_p4  ;;  %p2245_p5 = por %p2244_p3, %p2243_p2 }
  0xa7   : > { %v1370_v44 = vpop.permute.xlu0 %1369 }
  0xa8   : > { %v494_v30 = vpop.permute.xlu1 %493  ;;  %1391 = vst.msk [vmem:[#allocation2] sm:$0xff] %vm1390_vm0, %v1370_v44  ;;  %p2239_p1 = pneg %p2238_p0 }
  0xa9   : > { %514 = vst.msk [vmem:[#allocation2 + $0x70] sm:$0xff] %vm506_vm9, %v494_v30 }
  0xaa   : > { %p2246_p6 = pnand %p2245_p5, %p2239_p1 }
  0xab   : > { %v482_v59 = vpop.permute.xlu0 %481  ;;  %v1399_v61 = vld [vmem:[#allocation2 + $0x60] sm:$0x3f] }
  0xac   : > { %v490_v0 = vpop.permute.xlu1 %489  ;;  %508 = vst.msk [vmem:[#allocation2 + $0x10] sm:$0xff] %vm506_vm9, %v482_v59 }
  0xad   : > { %512 = vst.msk [vmem:[#allocation2 + $0x50] sm:$0xff] %vm506_vm9, %v490_v0  ;;  %v1580_v0 = vld [vmem:[#allocation2 + $0x48] sm:$0xff] }
  0xaf   : > { %v633_v54 = vpop.permute.xlu0 %632  ;;  %v1571_v12 = vld [vmem:[#allocation2] sm:$0xff] }
  0xb0   : > { %v621_v37 = vpop.permute.xlu1 %620  ;;  %653 = vst.msk [vmem:[#allocation2 + $0x70] sm:$0xff] %vm645_vm10, %v633_v54  ;;  %1728 = vmatmul.mubr.bf16.vlgmr.msra.gmra.mrb[0].mxu0 %v1571_v12  ;;  %v1588_v12 = vld [vmem:[#allocation2 + $0x88] sm:$0xff] }
  0xb1   : > { %647 = vst.msk [vmem:[#allocation2 + $0x10] sm:$0xff] %vm645_vm10, %v621_v37  ;;  %2041 = vmatprep.mubr.msk.bf16.mxu0 %vm334_vm5, %v1574_v39 }
  0xb3   : > { %v629_v32 = vpop.permute.xlu0 %628 }
  0xb4   : > { %v752_v51 = vpop.permute.xlu1 %751  ;;  %651 = vst.msk [vmem:[#allocation2 + $0x50] sm:$0xff] %vm645_vm10, %v629_v32 }
  0xb5   : > { %770 = vst.msk [vmem:[#allocation2 + $0x70] sm:$0x7f] %vm769_vm1, %v752_v51  ;;  %vm791_vm1 = vcmask 523655  }
  0xb7   : > { %v740_v31 = vpop.permute.xlu0 %739 }
  0xb8   : > { %v748_v7 = vpop.permute.xlu1 %747  ;;  %763 = vst.msk [vmem:[#allocation2 + $0x10] sm:$0xff] %vm761_vm11, %v740_v31 }
  0xb9   : > { %767 = vst.msk [vmem:[#allocation2 + $0x50] sm:$0xff] %vm761_vm11, %v748_v7 }
  0xbb   : > { %v925_v9 = vpop.permute.xlu0 %924 }
  0xbc   : > { %v933_v26 = vpop.permute.xlu1 %932  ;;  %948 = vst.msk [vmem:[#allocation2 + $0x10] sm:$0xff] %vm946_vm12, %v925_v9  ;;  %v956_v33 = vld [vmem:[#allocation2 + $0x70] sm:$0x7f] }
  0xbd   : > { %952 = vst.msk [vmem:[#allocation2 + $0x50] sm:$0xff] %vm946_vm12, %v933_v26 }
  0xbf   : > { %v1075_v53 = vpop.permute.xlu0 %1074 }
  0xc0   : > { %v1083_v38 = vpop.permute.xlu1 %1082  ;;  %1098 = vst.msk [vmem:[#allocation2 + $0x10] sm:$0xff] %vm1096_vm13, %v1075_v53 }
  0xc1   : > { %1102 = vst.msk [vmem:[#allocation2 + $0x50] sm:$0xff] %vm1096_vm13, %v1083_v38 }
  0xc3   : > { %v1382_v50 = vpop.permute.xlu0 %1381 }
  0xc4   : > { %v1194_v5 = vpop.permute.xlu1 %1193  ;;  %v1400_v45 = vsel %vm1398_vm7, %v1382_v50, %v1399_v61  ;;  %vm1456_vm7 = vsmask.f32 7958 }
  0xc5   : > { %1214 = vst.msk [vmem:[#allocation2 + $0x10] sm:$0xff] %vm1212_vm14, %v1194_v5  ;;  %1401 = vst [vmem:[#allocation2 + $0x60] sm:$0x3f] %v1400_v45 }
  0xc7   : > { %v1202_v43 = vpop.permute.xlu0 %1201 }
  0xc8   : > { %v1245_v1 = vpop.permute.xlu1 %1244  ;;  %1218 = vst.msk [vmem:[#allocation2 + $0x50] sm:$0xff] %vm1212_vm14, %v1202_v43 }
  0xc9   : > { %1254 = vst.msk [vmem:[#allocation2 + $0x60] sm:$0xc0] %vm1253_vm8, %v1245_v1  ;;  %vm1457_vm8 = vmand %vm1455_vm6, %vm1456_vm7  ;;  %vm531_vm6 = vcmask 261255   ;;  %vm532_vm7 = vsmask.f32 7966 }
  0xcb   : > { %v1372_v2 = vpop.permute.xlu0 %1371 }
  0xcc   : > { %v1380_v17 = vpop.permute.xlu1 %1379  ;;  %1392 = vst.msk [vmem:[#allocation2 + $0x10] sm:$0xff] %vm1390_vm0, %v1372_v2 }
  0xcd   : > { %1396 = vst.msk [vmem:[#allocation2 + $0x50] sm:$0xff] %vm1390_vm0, %v1380_v17  ;;  %v3138_v17 = vld [vmem:[%s3238_s3] ss:$0 sm:$0xff] }
  0xcf   : > { %v484_v29 = vpop.permute.xlu0 %483 }
  0xd0   : > { %v623_v8 = vpop.permute.xlu1 %622  ;;  %509 = vst.msk [vmem:[#allocation2 + $0x20] sm:$0xff] %vm506_vm9, %v484_v29  ;;  %v1458_v18 = vld [vmem:[#allocation2 + $0x60] sm:$0xe0] }
  0xd1   : > { %648 = vst.msk [vmem:[#allocation2 + $0x20] sm:$0xff] %vm645_vm10, %v623_v8 }
  0xd3   : > { %v937_v41 = vpop.permute.xlu0 %936  ;;  %v1573_v49 = vld [vmem:[#allocation2 + $0x10] sm:$0xff] }
  0xd4   : > { %v742_v52 = vpop.permute.xlu1 %741  ;;  %v1581_v16 = vld [vmem:[#allocation2 + $0x50] sm:$0xff]  ;;  %v957_v34 = vsel %vm955_vm4, %v937_v41, %v956_v33  ;;  %1736 = vmatmul.mubr.bf16.gmra.mrb[4].mxu0 %v1573_v49  ;;  %vm995_vm4 = vmand %vm993_vm2, %vm994_vm15  ;;  %vm664_vm2 = vcmask 392455   ;;  %vm654_vm15 = vcmask 391424  }
  0xd5   : > { %1768 = vmatmul.mubr.bf16.vlgmr.msra.gmra.mrb[0].mxu1 %v1581_v16  ;;  %764 = vst.msk [vmem:[#allocation2 + $0x20] sm:$0xff] %vm761_vm11, %v742_v52  ;;  %958 = vst [vmem:[#allocation2 + $0x70] sm:$0x7f] %v957_v34  ;;  %2042 = vmatprep.mubr.msk.bf16.mxu0 %vm334_vm5, %v1576_v28 }
  0xd6   : > { %2046 = vmatprep.mubr.msk.bf16.mxu1 %vm334_vm5, %v1584_v13 }
  0xd7   : > { %v786_v11 = vpop.permute.xlu0 %785 }
  0xd8   : > { %v927_v62 = vpop.permute.xlu1 %926  ;;  %792 = vst.msk [vmem:[#allocation2 + $0x70] sm:$0x80] %vm791_vm1, %v786_v11  ;;  %vm1104_vm1 = vcmask 784000  }
  0xd9   : > { %949 = vst.msk [vmem:[#allocation2 + $0x20] sm:$0xff] %vm946_vm12, %v927_v62 }
  0xdb   : > { %v1077_v55 = vpop.permute.xlu0 %1076 }
  0xdc   : > { %v1196_v56 = vpop.permute.xlu1 %1195  ;;  %1099 = vst.msk [vmem:[#allocation2 + $0x20] sm:$0xff] %vm1096_vm13, %v1077_v55 }
  0xdd   : > { %1215 = vst.msk [vmem:[#allocation2 + $0x20] sm:$0xff] %vm1212_vm14, %v1196_v56 }
  0xdf   : > { %v1447_v58 = vpop.permute.xlu0 %1446  ;;  %v996_v48 = vld [vmem:[#allocation2 + $0x70] sm:$0xc0] }
  0xe0   : > { %v496_v6 = vpop.permute.xlu1 %495  ;;  %v1459_v47 = vsel %vm1457_vm8, %v1447_v58, %v1458_v18  ;;  %vm533_vm8 = vmand %vm531_vm6, %vm532_vm7 }
  0xe1   : > { %v518_v19 = vsel %vm516_vm3, %v496_v6, %v517_v35  ;;  %1460 = vst [vmem:[#allocation2 + $0x60] sm:$0xe0] %v1459_v47  ;;  %vm1126_vm3 = vcmask 786054  }
  0xe2   : > { %519 = vst [vmem:[#allocation2 + $0x80] sm:$0xff] %v518_v19 }
  0xe3   : > { %v1374_v14 = vpop.permute.xlu0 %1373 }
  0xe4   : > { %v486_v15 = vpop.permute.xlu1 %485  ;;  %1393 = vst.msk [vmem:[#allocation2 + $0x20] sm:$0xff] %vm1390_vm0, %v1374_v14 }
  0xe5   : > { %510 = vst.msk [vmem:[#allocation2 + $0x30] sm:$0xff] %vm506_vm9, %v486_v15 }
  0xe7   : > { %v625_v25 = vpop.permute.xlu0 %624 }
  0xe8   : > { %v744_v40 = vpop.permute.xlu1 %743  ;;  %649 = vst.msk [vmem:[#allocation2 + $0x30] sm:$0xff] %vm645_vm10, %v625_v25  ;;  %v1583_v10 = vld [vmem:[#allocation2 + $0x60] sm:$0xff] }
  0xe9   : > { %765 = vst.msk [vmem:[#allocation2 + $0x30] sm:$0xff] %vm761_vm11, %v744_v40  ;;  %1776 = vmatmul.mubr.bf16.gmra.mrb[4].mxu1 %v1583_v10  ;;  %v534_v27 = vld [vmem:[#allocation2 + $0x80] sm:$0x80] }
  0xea   : > { %2047 = vmatprep.mubr.msk.bf16.mxu1 %vm334_vm5, %v1586_v42 }
  0xeb   : > { %v988_v20 = vpop.permute.xlu0 %987  ;;  %v1575_v21 = vld [vmem:[#allocation2 + $0x20] sm:$0xff] }
  0xec   : > { %v929_v24 = vpop.permute.xlu1 %928  ;;  %v997_v57 = vsel %vm995_vm4, %v988_v20, %v996_v48  ;;  %1744 = vmatmul.mubr.bf16.gmra.mrb[8].mxu0 %v1575_v21 }
  0xed   : > { %950 = vst.msk [vmem:[#allocation2 + $0x30] sm:$0xff] %vm946_vm12, %v929_v24  ;;  %998 = vst [vmem:[#allocation2 + $0x70] sm:$0xc0] %v997_v57  ;;  %2043 = vmatprep.mubr.msk.bf16.mxu0 %vm334_vm5, %v1578_v46 }
  0xef   : > { %v1079_v63 = vpop.permute.xlu0 %1078 }
  0xf0   : > { %v1087_v23 = vpop.permute.xlu1 %1086  ;;  %1100 = vst.msk [vmem:[#allocation2 + $0x30] sm:$0xff] %vm1096_vm13, %v1079_v63 }
  0xf1   : > { %1105 = vst.msk [vmem:[#allocation2 + $0x70] sm:$0x3f] %vm1104_vm1, %v1087_v23 }
  0xf3   : > { %v1121_v3 = vpop.permute.xlu0 %1120 }
  0xf4   : > { %v1198_v22 = vpop.permute.xlu1 %1197  ;;  %1127 = vst.msk [vmem:[#allocation2 + $0x70] sm:$0xc0] %vm1126_vm3, %v1121_v3 }
  0xf5   : > { %1216 = vst.msk [vmem:[#allocation2 + $0x30] sm:$0xff] %vm1212_vm14, %v1198_v22 }
  0xf7   : > { %v1247_v4 = vpop.permute.xlu0 %1246 }
  0xf8   : > { %v1376_v60 = vpop.permute.xlu1 %1375  ;;  %1255 = vst.msk [vmem:[#allocation2 + $0x70] sm:$0xff] %vm1212_vm14, %v1247_v4 }
  0xf9   : > { %1394 = vst.msk [vmem:[#allocation2 + $0x30] sm:$0xff] %vm1390_vm0, %v1376_v60 }
  0xfb   : > { %v1449_v44 = vpop.permute.xlu0 %1448 }
  0xfc   : > { %v529_v36 = vpop.permute.xlu1 %528  ;;  %1461 = vst.msk [vmem:[#allocation2 + $0x70] sm:$0xff] %vm1390_vm0, %v1449_v44 }
  0xfd   : > { %v535_v30 = vsel %vm533_vm8, %v529_v36, %v534_v27 }
  0xfe   : > { %536 = vst [vmem:[#allocation2 + $0x80] sm:$0x80] %v535_v30 }
  0xff   : > { %v488_v39 = vpop.permute.xlu0 %487 }
 0x100   : > { %v627_v59 = vpop.permute.xlu1 %626  ;;  %v1577_v37 = vld [vmem:[#allocation2 + $0x30] sm:$0xff]  ;;  %511 = vst.msk [vmem:[#allocation2 + $0x40] sm:$0xff] %vm506_vm9, %v488_v39 }
 0x101   : > { %1752 = vmatmul.mubr.bf16.gmra.mrb[12].mxu0 %v1577_v37  ;;  %650 = vst.msk [vmem:[#allocation2 + $0x40] sm:$0xff] %vm645_vm10, %v627_v59 }
 0x102   : > { %2044 = vmatprep.mubr.msk.bf16.mxu0 %vm334_vm5, %v1580_v0 }
 0x103   : > { %v635_v51 = vpop.permute.xlu0 %634  ;;  %v1585_v32 = vld [vmem:[#allocation2 + $0x70] sm:$0xff] }
 0x104   : > { %v662_v54 = vpop.permute.xlu1 %661  ;;  %655 = vst.msk [vmem:[#allocation2 + $0x80] sm:$0x7f] %vm654_vm15, %v635_v51  ;;  %1784 = vmatmul.mubr.bf16.gmra.mrb[8].mxu1 %v1585_v32 }
 0x105   : > { %665 = vst.msk [vmem:[#allocation2 + $0x80] sm:$0x80] %vm664_vm2, %v662_v54  ;;  %2048 = vmatprep.mubr.msk.bf16.mxu1 %vm334_vm5, %v1588_v12 }
 0x107   : > { %v746_v31 = vpop.permute.xlu0 %745 }
 0x108   : > { %v788_v7 = vpop.permute.xlu1 %787  ;;  %766 = vst.msk [vmem:[#allocation2 + $0x40] sm:$0xff] %vm761_vm11, %v746_v31 }
 0x109   : > { %793 = vst.msk [vmem:[#allocation2 + $0x80] sm:$0xff] %vm761_vm11, %v788_v7 }
 0x10b   : > { %v931_v9 = vpop.permute.xlu0 %930 }
 0x10c   : > { %v990_v26 = vpop.permute.xlu1 %989  ;;  %951 = vst.msk [vmem:[#allocation2 + $0x40] sm:$0xff] %vm946_vm12, %v931_v9 }
 0x10d   : > { %999 = vst.msk [vmem:[#allocation2 + $0x80] sm:$0xff] %vm946_vm12, %v990_v26 }
 0x10f   : > { %v1081_v53 = vpop.permute.xlu0 %1080 }
 0x110   : > { %v1123_v38 = vpop.permute.xlu1 %1122  ;;  %1101 = vst.msk [vmem:[#allocation2 + $0x40] sm:$0xff] %vm1096_vm13, %v1081_v53 }
 0x111   : > { %1128 = vst.msk [vmem:[#allocation2 + $0x80] sm:$0xff] %vm1096_vm13, %v1123_v38 }
 0x113   : > { %v1200_v50 = vpop.permute.xlu0 %1199 }
 0x114   : > { %v1249_v5 = vpop.permute.xlu1 %1248  ;;  %1217 = vst.msk [vmem:[#allocation2 + $0x40] sm:$0xff] %vm1212_vm14, %v1200_v50 }
 0x115   : > { %1256 = vst.msk [vmem:[#allocation2 + $0x80] sm:$0xff] %vm1212_vm14, %v1249_v5 }
 0x117   : > { %v1378_v45 = vpop.permute.xlu0 %1377 }
 0x118   : > { %v1451_v61 = vpop.permute.xlu1 %1450  ;;  %1395 = vst.msk [vmem:[#allocation2 + $0x40] sm:$0xff] %vm1390_vm0, %v1378_v45 }
 0x119   : > { %1462 = vst.msk [vmem:[#allocation2 + $0x80] sm:$0xff] %vm1390_vm0, %v1451_v61 }
 0x11f   : > { %v1579_v43 = vld [vmem:[#allocation2 + $0x40] sm:$0xff] }
 0x120   : > { %v1587_v1 = vld [vmem:[#allocation2 + $0x80] sm:$0xff]  ;;  %1760 = vmatmul.mubr.bf16.gmra.mrb[16].mxu0 %v1579_v43 }
 0x121   : > { %1792 = vmatmul.mubr.bf16.gmra.mrb[12].mxu1 %v1587_v1 }
 0x183   : > { %v1729_v2 = vpop.f32.mrb[0].mxu0 }
 0x184   : > { %v1730_v8 = vadd.f32 %v3138_v17, %v1729_v2  ;;  %v1731_v29 = vpop.f32.mrb[1].mxu0 }
 0x185   : > { %v1732_v13 = vpop.f32.mrb[2].mxu0 }
 0x186   : > { %1800 = vst [vmem:[%s3141_s13] sm:$0xff] %v1730_v8  ;;  %v1733_v52 = vadd.f32 %v3138_v17, %v1732_v13  ;;  %v1734_v16 = vpop.f32.mrb[3].mxu0 }
 0x188   : > { %1801 = vst [vmem:[%s3141_s13 + $0x8] sm:$0xff] %v1733_v52 }
 0x1a7   : > { %v1737_v34 = vpop.f32.mrb[4].mxu0 }
 0x1a8   : > { %v1769_v28 = vpop.f32.mrb[0].mxu1  ;;  %v1738_v56 = vadd.f32 %v3138_v17, %v1737_v34  ;;  %v1739_v35 = vpop.f32.mrb[5].mxu0 }
 0x1a9   : > { %v1770_v41 = vadd.f32 %v3138_v17, %v1769_v28  ;;  %v1771_v33 = vpop.f32.mrb[1].mxu1  ;;  %v1740_v55 = vpop.f32.mrb[6].mxu0 }
 0x1aa   : > { %v1772_v49 = vpop.f32.mrb[2].mxu1  ;;  %1802 = vst [vmem:[%s3141_s13 + $0x10] sm:$0xff] %v1738_v56  ;;  %v1741_v6 = vadd.f32 %v3138_v17, %v1740_v55  ;;  %v1742_v19 = vpop.f32.mrb[7].mxu0 }
 0x1ab   : > { %1810 = vst [vmem:[%s3141_s13 + $0x50] sm:$0xff] %v1770_v41  ;;  %v1773_v62 = vadd.f32 %v3138_v17, %v1772_v49  ;;  %v1774_v11 = vpop.f32.mrb[3].mxu1 }
 0x1ac   : > { %1803 = vst [vmem:[%s3141_s13 + $0x18] sm:$0xff] %v1741_v6 }
 0x1ad   : > { %1811 = vst [vmem:[%s3141_s13 + $0x58] sm:$0xff] %v1773_v62 }
 0x1bc   : > { %v1777_v58 = vpop.f32.mrb[4].mxu1 }
 0x1bd   : > { %v1778_v18 = vadd.f32 %v3138_v17, %v1777_v58  ;;  %v1779_v47 = vpop.f32.mrb[5].mxu1 }
 0x1be   : > { %v1780_v15 = vpop.f32.mrb[6].mxu1 }
 0x1bf   : > { %1812 = vst [vmem:[%s3141_s13 + $0x60] sm:$0xff] %v1778_v18  ;;  %v1781_v14 = vadd.f32 %v3138_v17, %v1780_v15  ;;  %v1745_v40 = vpop.f32.mrb[8].mxu0  ;;  %v1782_v25 = vpop.f32.mrb[7].mxu1 }
 0x1c0   : > { %v1746_v42 = vadd.f32 %v3138_v17, %v1745_v40  ;;  %v1747_v10 = vpop.f32.mrb[9].mxu0 }
 0x1c1   : > { %1813 = vst [vmem:[%s3141_s13 + $0x68] sm:$0xff] %v1781_v14  ;;  %v1748_v24 = vpop.f32.mrb[10].mxu0 }
 0x1c2   : > { %1804 = vst [vmem:[%s3141_s13 + $0x20] sm:$0xff] %v1746_v42  ;;  %v1749_v46 = vadd.f32 %v3138_v17, %v1748_v24  ;;  %v1750_v20 = vpop.f32.mrb[11].mxu0 }
 0x1c4   : > { %1805 = vst [vmem:[%s3141_s13 + $0x28] sm:$0xff] %v1749_v46 }
 0x1d4   : > { %v1753_v48 = vpop.f32.mrb[12].mxu0 }
 0x1d5   : > { %v1754_v21 = vadd.f32 %v3138_v17, %v1753_v48  ;;  %v1755_v57 = vpop.f32.mrb[13].mxu0 }
 0x1d6   : > { %v1756_v23 = vpop.f32.mrb[14].mxu0 }
 0x1d7   : > { %1806 = vst [vmem:[%s3141_s13 + $0x30] sm:$0xff] %v1754_v21  ;;  %v1757_v63 = vadd.f32 %v3138_v17, %v1756_v23  ;;  %v1758_v22 = vpop.f32.mrb[15].mxu0  ;;  %v1785_v3 = vpop.f32.mrb[8].mxu1 }
 0x1d8   : > { %v1786_v60 = vadd.f32 %v3138_v17, %v1785_v3  ;;  %v1787_v4 = vpop.f32.mrb[9].mxu1 }
 0x1d9   : > { %1807 = vst [vmem:[%s3141_s13 + $0x38] sm:$0xff] %v1757_v63  ;;  %v1788_v36 = vpop.f32.mrb[10].mxu1 }
 0x1da   : > { %1814 = vst [vmem:[%s3141_s13 + $0x70] sm:$0xff] %v1786_v60  ;;  %v1789_v27 = vadd.f32 %v3138_v17, %v1788_v36  ;;  %v1790_v30 = vpop.f32.mrb[11].mxu1 }
 0x1dc   : > { %1815 = vst [vmem:[%s3141_s13 + $0x78] sm:$0xff] %v1789_v27 }
 0x1f3   : > { %v1761_v39 = vpop.f32.mrb[16].mxu0 }
 0x1f4   : > { %v1793_v44 = vpop.f32.mrb[12].mxu1  ;;  %v1762_v51 = vadd.f32 %v3138_v17, %v1761_v39  ;;  %v1763_v32 = vpop.f32.mrb[17].mxu0 }
 0x1f5   : > { %v1794_v0 = vadd.f32 %v3138_v17, %v1793_v44  ;;  %v1795_v59 = vpop.f32.mrb[13].mxu1  ;;  %v1764_v7 = vpop.f32.mrb[18].mxu0 }
 0x1f6   : > { %v1796_v37 = vpop.f32.mrb[14].mxu1  ;;  %1808 = vst [vmem:[%s3141_s13 + $0x40] sm:$0xff] %v1762_v51  ;;  %v1765_v31 = vadd.f32 %v3138_v17, %v1764_v7  ;;  %v1766_v26 = vpop.f32.mrb[19].mxu0 }
 0x1f7   : > { %1816 = vst [vmem:[%s3141_s13 + $0x80] sm:$0xff] %v1794_v0  ;;  %v1797_v54 = vadd.f32 %v3138_v17, %v1796_v37  ;;  %v1798_v12 = vpop.f32.mrb[15].mxu1 }
 0x1f8   : > { %1809 = vst [vmem:[%s3141_s13 + $0x48] sm:$0xff] %v1765_v31 }
 0x1f9   : > { %1817 = vst [vmem:[%s3141_s13 + $0x88] sm:$0xff] %v1797_v54 }
 0x1fa   : > { %2249 = shalt.err (!%p2246_p6)
}
 0x1fb   : > { %s2250_s6 = scalar_lea.hbm %s3180_s8, 2304  ;;  %s2254_s10 = scalar_lea.hbm %s3239_s4, 4608 }
 0x1fc   : > { %p2251_p7 = scmp.ne.s32.totalorder %s3180_s8, %s2250_s6  ;;  %p2255_p11 = scmp.lt.u32.totalorder %s3180_s8, %s3239_s4 }
 0x1fd   : > { %p2256_p12 = scmp.lt.u32.totalorder %s2254_s10, %s2250_s6  ;;  %p2258_p0 = scmp.lt.u32.totalorder %s2250_s6, %s3180_s8 }
 0x1fe   : > { %p2252_p9 = pnand %p2251_p7, %p2392_p4 }
 0x1ff   : > { %p2257_p13 = por %p2256_p12, %p2255_p11 }
 0x200   : > { %p2253_p10 = pneg %p2252_p9 }
 0x201   : > { %p2259_p1 = por %p2258_p0, %p2257_p13 }
 0x203   : > { %p2260_p2 = pnand %p2259_p1, %p2253_p10 }
 0x205   : > { %2263 = shalt.err (!%p2260_p2)
}
 0x206   : > { %s2325_s13 = smov 128   ;;  %s2326_s14 = smov 8  }
 0x207   : > { %2073 = dma.vmem_to_hbm [thread:$0]  (%p2392_p4), %s3182_s21, 2304, %s3180_s8, %s3189_s18, %s2325_s13, %s2325_s13, %s2326_s14  }
 0x208 PF: > { %p2079_p3 = scmp.ge.s32.totalorder %s2314_s20, 2  ;;  %s1849_s24 = sand.u32 1, %s2294_s15  }
 0x209   : > { %s1850_s5 = scalar_lea.sflag [#allocation4], %s1849_s24 }
 0x20a   : > { %p2076_p5 = pnand %p2079_p3, %p2399_p8 }
 0x20c   : > { %2289 = dma.done.wait (!%p2076_p5), %s1850_s5, 2304  }
 0x20d   : > { %2291 = vsyncadd (!%p2076_p5), %s1850_s5, 4294964992  ;;  %s17_s20 = sadd.s32 1, %s2314_s20   ;;  %s3242_s15 = smov %s2298_s16 }
 0x20e   : > { %p14_p6 = scmp.ge.s32.totalorder %s17_s20, 4   ;;  %s3243_s16 = smov %s2302_s17 }
 0x20f   : > { %s3244_s17 = smov %s2405_s28  ;;  %s3245_s18 = smov %s2310_s19 }
 0x210   : > { %s3246_s19 = smov %s3248_s23  ;;  %16 = sbr.rel (!%p14_p6) target bundleno = 4 (0x4), region = 74 }
 0x217   :  { %1855 = vsyncpa [#allocation4], 1 }
 0x218   :  { %1857 = vsyncpa [#allocation4 + $0x1], 1 }

</bundles_post_ra>
